<compile_context>
chip_gen: v5e
topology: v5e:2x2
jax: 0.10.0
libtpu: 0.0.40
codegen_flags: <defaults>
</compile_context>

<pallas_src>
import jax
import jax.numpy as jnp
from jax.experimental import pallas as pl
from jax.experimental.pallas import tpu as pltpu

EPS = 1e-5


# --------------------------------------------------------------------------
# Pallas kernel: conv1 -> bn -> relu -> pool -> conv2 -> bn -> relu -> pool
#                -> fc1 -> bn -> relu -> fc2 -> bn -> relu -> fc3
# (all BN already folded into the weights; dropout = identity)
# --------------------------------------------------------------------------
def cnn_kernel(x_ref,
               w1_ref, b1_ref,
               w2_ref, b2_ref,
               fw1_ref, fb1_ref,
               fw2_ref, fb2_ref,
               fw3_ref, fb3_ref,
               o_ref):
    Bt, Lp6 = x_ref.shape
    Lext = Lp6 - 2            # = L + 4 conv1 outputs (2 halo positions / side)
    L2p2 = Lext // 2          # = L/2 + 2 pooled positions (1 halo / side)
    L2 = L2p2 - 2
    L4 = L2 // 2

    x = x_ref[...]                                               # (Bt, L+6)
    w1 = w1_ref[...]                                             # (3, 16)

    # ---- Conv1d(1 -> 16, k=3) + folded BN + ReLU over the extended range ----
    h1 = (x[:, 0:Lext, None]       * w1[0].reshape(1, 1, 16)
          + x[:, 1:Lext + 1, None] * w1[1].reshape(1, 1, 16)
          + x[:, 2:Lext + 2, None] * w1[2].reshape(1, 1, 16)
          + b1_ref[...].reshape(1, 1, 16))
    h1 = jnp.maximum(h1, 0.0)                                    # (Bt, L+4, 16)

    # ---- MaxPool1d(2): pairwise max (pure VPU, no axis reduce) ----
    h1r = h1.reshape(Bt, L2p2, 2, 16)
    p1 = jnp.maximum(h1r[:, :, 0, :], h1r[:, :, 1, :])           # (Bt, L2+2, 16)
    # zero the two halo rows -> exactly the zero-padding conv2 needs
    pos = jax.lax.broadcasted_iota(jnp.int32, (Bt, L2p2, 16), 1)
    p1 = jnp.where((pos >= 1) & (pos <= L2), p1, 0.0)

    # ---- Conv1d(16 -> 32, k=3, pad=1) + folded BN + ReLU: one K=48 matmul ----
    col = jnp.concatenate([p1[:, 0:L2, :],
                           p1[:, 1:L2 + 1, :],
                           p1[:, 2:L2 + 2, :]], axis=-1)         # (Bt, L2, 48)
    h2 = jnp.dot(col.reshape(Bt * L2, 48).astype(w2_ref.dtype), w2_ref[...],
                 preferred_element_type=jnp.float32) + b2_ref[...]
    h2 = jnp.maximum(h2, 0.0)                                    # (Bt*L2, 32)

    # ---- MaxPool1d(2) ----
    h2r = h2.reshape(Bt, L4, 2, 32)
    p2 = jnp.maximum(h2r[:, :, 0, :], h2r[:, :, 1, :])           # (Bt, L4, 32)

    # ---- fc1 + folded BN + ReLU: single K = L4*32 matmul ----
    p2_flat = p2.reshape(Bt, L4 * 32)                            # order l*32 + c
    z1 = jnp.dot(p2_flat.astype(fw1_ref.dtype), fw1_ref[...],
                 preferred_element_type=jnp.float32) + fb1_ref[...]
    z1 = jnp.maximum(z1, 0.0)

    # ---- fc2 + folded BN + ReLU ----
    z2 = jnp.dot(z1.astype(fw2_ref.dtype), fw2_ref[...],
                 preferred_element_type=jnp.float32) + fb2_ref[...]
    z2 = jnp.maximum(z2, 0.0)

    # ---- fc3: lane-dense 128-wide padded output ----
    o_ref[...] = jnp.dot(z2.astype(fw3_ref.dtype), fw3_ref[...],
                         preferred_element_type=jnp.float32) + fb3_ref[...]


# --------------------------------------------------------------------------
# Wrapper: BN folding / layout glue + batch-tiled pallas_call
# --------------------------------------------------------------------------
def _round_up(n, m):
    return (n + m - 1) // m * m


def cnn_forward(x, P, num_classes=2, batch_tile=512, mxu_dtype=jnp.float32):
    B, L = x.shape
    assert L % 4 == 0, "input_size must be divisible by 4"
    L2, L4 = L // 2, L // 4
    OUT = 128                                    # lane-dense classifier head
    assert num_classes <= OUT, "num_classes must be <= 128"

    def fold(g, be, m, v):
        s = g / jnp.sqrt(v + EPS)
        return s, be - m * s

    s1, t1 = fold(P['g1'], P['be1'], P['m1'], P['v1'])
    s2, t2 = fold(P['g2'], P['be2'], P['m2'], P['v2'])
    s3, t3 = fold(P['g3'], P['be3'], P['m3'], P['v3'])
    s4, t4 = fold(P['g4'], P['be4'], P['m4'], P['v4'])

    # ---- fold BN into weights / biases (trace-time, zero runtime cost) ----
    w1k = jnp.transpose(P['w1'][:, 0, :], (1, 0)) * s1[None, :]           # (3, 16)
    b1f = (P['b1'] * s1 + t1).reshape(1, 16)
    # conv2 im2col weight, row index = k*16 + cin
    w2k = (jnp.transpose(P['w2'], (2, 1, 0)) * s2[None, None, :]).reshape(48, 32)
    b2f = (P['b2'] * s2 + t2).reshape(1, 32)
    # fc1: PyTorch flat index c*L4 + l  ->  kernel flat index l*32 + c
    fw1 = jnp.transpose(P['fw1'].reshape(64, 32, L4), (2, 1, 0)).reshape(L4 * 32, 64)
    fw1 = fw1 * s3[None, :]
    fb1f = (P['fb1'] * s3 + t3).reshape(1, 64)
    fw2 = P['fw2'].T * s4[None, :]                                        # (64, 32)
    fb2f = (P['fb2'] * s4 + t4).reshape(1, 32)
    # fc3 padded to 128 output lanes (sliced back outside the kernel)
    fw3 = jnp.zeros((32, OUT), jnp.float32).at[:, :num_classes].set(P['fw3'].T)
    fb3 = jnp.zeros((1, OUT), jnp.float32).at[0, :num_classes].set(P['fb3'])

    # Optional bf16 MXU operands (v6e/v7x); default f32 keeps 2e-3 tolerance.
    w2k = w2k.astype(mxu_dtype)
    fw1 = fw1.astype(mxu_dtype)
    fw2 = fw2.astype(mxu_dtype)
    fw3 = fw3.astype(mxu_dtype)

    # ---- batch tiling (grid) ----
    # rough per-row f32 VMEM cost of the in-kernel intermediates (small channel
    # counts pad to 128 lanes); cap Bt so intermediates stay ~<= 12 MiB, which
    # is safe even against v7x's 64 MiB VMEM / 32 MiB scoped default.
    per_row = 4 * 128 * ((L + 4) + (L2 + 2) + L2 + L2 + L4 + 3)
    bt_cap = max(8, (12 << 20) // per_row // 8 * 8)
    # at least 2 grid steps when B > 8, so v7x's two TensorCores both get work
    half = max(8, _round_up(pl.cdiv(_round_up(B, 8), 2), 8))
    Bt = min(_round_up(batch_tile, 8), bt_cap, half)
    B_pad = _round_up(B, Bt)

    # pad batch to a tile multiple; pad length by 3 per side so the kernel can
    # compute the conv2 halo without any VMEM pad scratch (2-D, lane-dense rows)
    xp = jnp.pad(x, ((0, B_pad - B), (3, 3)))                    # (B_pad, L+6)

    def rep(a):
        nd = a.ndim
        return pl.BlockSpec(a.shape, lambda b, _nd=nd: (0,) * _nd)

    weights = (w1k, b1f, w2k, b2f, fw1, fb1f, fw2, fb2f, fw3, fb3)

    # explicit VMEM budget: double-buffered x/out blocks + intermediates + weights
    w_bytes = sum(int(w.size) * w.dtype.itemsize for w in weights)
    est = (2 * 4 * Bt * _round_up(L + 6, 128)
           + 2 * 4 * Bt * OUT
           + per_row * Bt
           + 2 * w_bytes)
    vmem_limit = int(min(48 << 20, max(16 << 20, 2 * est)))

    out = pl.pallas_call(
        cnn_kernel,
        out_shape=jax.ShapeDtypeStruct((B_pad, OUT), jnp.float32),
        grid=(B_pad // Bt,),
        in_specs=[pl.BlockSpec((Bt, L + 6), lambda b: (b, 0))]
                 + [rep(w) for w in weights],
        out_specs=pl.BlockSpec((Bt, OUT), lambda b: (b, 0)),
        compiler_params=pltpu.CompilerParams(
            dimension_semantics=("parallel",),
            vmem_limit_bytes=vmem_limit),
    )(xp, *weights)

    return out[:B, :num_classes]


# --------------------------------------------------------------------------
# Pure-JAX reference mirroring the PyTorch module (eval mode)
# --------------------------------------------------------------------------
def _conv1d(x, w, b):  # x (B,Cin,L), w (Cout,Cin,3), pad=1
    L = x.shape[2]
    xp = jnp.pad(x, ((0, 0), (0, 0), (1, 1)))
    out = sum(jnp.einsum('bcl,oc->bol', xp[:, :, k:k + L], w[:, :, k],
                         precision='highest') for k in range(3))
    return out + b[None, :, None]


def _bn_ncl(x, g, be, m, v):
    return (x - m[None, :, None]) / jnp.sqrt(v + EPS)[None, :, None] \
        * g[None, :, None] + be[None, :, None]


def _bn_nc(x, g, be, m, v):
    return (x - m[None, :]) / jnp.sqrt(v + EPS)[None, :] * g[None, :] + be[None, :]


def ref_forward(x, P):
    B = x.shape[0]
    h = x.reshape(B, 1, -1)
    h = jnp.maximum(_bn_ncl(_conv1d(h, P['w1'], P['b1']),
                            P['g1'], P['be1'], P['m1'], P['v1']), 0.0)
    h = jnp.maximum(h[:, :, 0::2], h[:, :, 1::2])            # MaxPool1d(2)
    h = jnp.maximum(_bn_ncl(_conv1d(h, P['w2'], P['b2']),
                            P['g2'], P['be2'], P['m2'], P['v2']), 0.0)
    h = jnp.maximum(h[:, :, 0::2], h[:, :, 1::2])
    h = h.reshape(B, -1)                                      # (B, 32*L4)
    h = jnp.dot(h, P['fw1'].T, precision='highest') + P['fb1']
    h = jnp.maximum(_bn_nc(h, P['g3'], P['be3'], P['m3'], P['v3']), 0.0)
    h = jnp.dot(h, P['fw2'].T, precision='highest') + P['fb2']
    h = jnp.maximum(_bn_nc(h, P['g4'], P['be4'], P['m4'], P['v4']), 0.0)
    return jnp.dot(h, P['fw3'].T, precision='highest') + P['fb3']


# --------------------------------------------------------------------------
# Deterministic parameter init (PyTorch layouts)
# --------------------------------------------------------------------------
def init_params(key, input_size, num_classes=2):
    flat = 32 * (input_size // 4)
    ks = jax.random.split(key, 26)

    def n(k, shape, scale=0.1):
        return scale * jax.random.normal(k, shape, jnp.float32)

    P = {
        'w1': n(ks[0], (16, 1, 3)), 'b1': n(ks[1], (16,)),
        'g1': 1.0 + n(ks[2], (16,)), 'be1': n(ks[3], (16,)),
        'm1': n(ks[4], (16,)), 'v1': 1.0 + 0.1 * jax.random.uniform(ks[5], (16,)),
        'w2': n(ks[6], (32, 16, 3)), 'b2': n(ks[7], (32,)),
        'g2': 1.0 + n(ks[8], (32,)), 'be2': n(ks[9], (32,)),
        'm2': n(ks[10], (32,)), 'v2': 1.0 + 0.1 * jax.random.uniform(ks[11], (32,)),
        'fw1': n(ks[12], (64, flat)), 'fb1': n(ks[13], (64,)),
        'g3': 1.0 + n(ks[14], (64,)), 'be3': n(ks[15], (64,)),
        'm3': n(ks[16], (64,)), 'v3': 1.0 + 0.1 * jax.random.uniform(ks[17], (64,)),
        'fw2': n(ks[18], (32, 64)), 'fb2': n(ks[19], (32,)),
        'g4': 1.0 + n(ks[20], (32,)), 'be4': n(ks[21], (32,)),
        'm4': n(ks[22], (32,)), 'v4': 1.0 + 0.1 * jax.random.uniform(ks[23], (32,)),
        'fw3': n(ks[24], (num_classes, 32)), 'fb3': n(ks[25], (num_classes,)),
    }
    return P


if __name__ == "__main__":
    key = jax.random.PRNGKey(0)

    # --- case 1: tiny (single grid step) ---
    k_x, k_p = jax.random.split(key)
    batch, input_size, num_classes = 8, 16, 2
    x = jax.random.normal(k_x, (batch, input_size), jnp.float32)
    params = init_params(k_p, input_size, num_classes)
    out = jax.block_until_ready(cnn_forward(x, params, num_classes))
    ref = jax.block_until_ready(ref_forward(x, params))
    assert out.shape == (batch, num_classes)
    assert jnp.allclose(out, ref, rtol=2e-3, atol=2e-3), \
        f"mismatch: max abs err {jnp.max(jnp.abs(out - ref))}"

    # --- case 2: multi-tile grid (exercises batch tiling / 2 grid steps) ---
    k_x2, k_p2 = jax.random.split(jax.random.PRNGKey(1))
    batch2, input_size2 = 96, 32
    x2 = jax.random.normal(k_x2, (batch2, input_size2), jnp.float32)
    params2 = init_params(k_p2, input_size2, num_classes)
    out2 = jax.block_until_ready(cnn_forward(x2, params2, num_classes))
    ref2 = jax.block_until_ready(ref_forward(x2, params2))
    assert out2.shape == (batch2, num_classes)
    assert jnp.allclose(out2, ref2, rtol=2e-3, atol=2e-3), \
        f"mismatch: max abs err {jnp.max(jnp.abs(out2 - ref2))}"

    print("KERNEL_OK")
</pallas_src>

<mosaic_0001>
module attributes {stable_mosaic.version = 11 : i64} {
  func.func @cnn_kernel(%arg0: i32, %arg1: memref<8x22xf32, #tpu.memory_space<vmem>>, %arg2: memref<3x16xf32, #tpu.memory_space<vmem>>, %arg3: memref<1x16xf32, #tpu.memory_space<vmem>>, %arg4: memref<48x32xf32, #tpu.memory_space<vmem>>, %arg5: memref<1x32xf32, #tpu.memory_space<vmem>>, %arg6: memref<128x64xf32, #tpu.memory_space<vmem>>, %arg7: memref<1x64xf32, #tpu.memory_space<vmem>>, %arg8: memref<64x32xf32, #tpu.memory_space<vmem>>, %arg9: memref<1x32xf32, #tpu.memory_space<vmem>>, %arg10: memref<32x128xf32, #tpu.memory_space<vmem>>, %arg11: memref<1x128xf32, #tpu.memory_space<vmem>>, %arg12: memref<8x128xf32, #tpu.memory_space<vmem>>) attributes {dimension_semantics = [#tpu.dimension_semantics<parallel>], iteration_bounds = array<i64: 1>, scalar_prefetch = 0 : i64, scratch_operands = 0 : i64, tpu.core_type = #tpu.core_type<tc>, window_params = [{transform_indices = @transform_0, window_bounds = array<i64: 8, 22>}, {pipeline_mode = #tpu.pipeline_mode<synchronous>, transform_indices = @transform_1, window_bounds = array<i64: 3, 16>}, {pipeline_mode = #tpu.pipeline_mode<synchronous>, transform_indices = @transform_2, window_bounds = array<i64: 1, 16>}, {pipeline_mode = #tpu.pipeline_mode<synchronous>, transform_indices = @transform_3, window_bounds = array<i64: 48, 32>}, {pipeline_mode = #tpu.pipeline_mode<synchronous>, transform_indices = @transform_4, window_bounds = array<i64: 1, 32>}, {pipeline_mode = #tpu.pipeline_mode<synchronous>, transform_indices = @transform_5, window_bounds = array<i64: 128, 64>}, {pipeline_mode = #tpu.pipeline_mode<synchronous>, transform_indices = @transform_6, window_bounds = array<i64: 1, 64>}, {pipeline_mode = #tpu.pipeline_mode<synchronous>, transform_indices = @transform_7, window_bounds = array<i64: 64, 32>}, {pipeline_mode = #tpu.pipeline_mode<synchronous>, transform_indices = @transform_8, window_bounds = array<i64: 1, 32>}, {pipeline_mode = #tpu.pipeline_mode<synchronous>, transform_indices = @transform_9, window_bounds = array<i64: 32, 128>}, {pipeline_mode = #tpu.pipeline_mode<synchronous>, transform_indices = @transform_10, window_bounds = array<i64: 1, 128>}, {transform_indices = @transform_11, window_bounds = array<i64: 8, 128>}]} {
    %c0 = arith.constant 0 : index
    %c0_0 = arith.constant 0 : index
    %0 = vector.load %arg1[%c0, %c0_0] : memref<8x22xf32, #tpu.memory_space<vmem>>, vector<8x22xf32>
    %c0_1 = arith.constant 0 : index
    %c0_2 = arith.constant 0 : index
    %1 = vector.load %arg2[%c0_1, %c0_2] : memref<3x16xf32, #tpu.memory_space<vmem>>, vector<3x16xf32>
    %2 = vector.extract_strided_slice %0 {offsets = [0, 0], sizes = [8, 20], strides = [1, 1]} : vector<8x22xf32> to vector<8x20xf32>
    %3 = vector.shape_cast %2 : vector<8x20xf32> to vector<8x20x1xf32>
    %4 = vector.extract_strided_slice %1 {offsets = [0, 0], sizes = [1, 16], strides = [1, 1]} : vector<3x16xf32> to vector<1x16xf32>
    %5 = vector.shape_cast %4 : vector<1x16xf32> to vector<16xf32>
    %6 = vector.shape_cast %5 : vector<16xf32> to vector<1x1x16xf32>
    %7 = vector.broadcast %3 : vector<8x20x1xf32> to vector<8x20x16xf32>
    %8 = vector.broadcast %6 : vector<1x1x16xf32> to vector<8x20x16xf32>
    %9 = arith.mulf %7, %8 : vector<8x20x16xf32>
    %10 = vector.extract_strided_slice %0 {offsets = [0, 1], sizes = [8, 20], strides = [1, 1]} : vector<8x22xf32> to vector<8x20xf32>
    %11 = vector.shape_cast %10 : vector<8x20xf32> to vector<8x20x1xf32>
    %12 = vector.extract_strided_slice %1 {offsets = [1, 0], sizes = [1, 16], strides = [1, 1]} : vector<3x16xf32> to vector<1x16xf32>
    %13 = vector.shape_cast %12 : vector<1x16xf32> to vector<16xf32>
    %14 = vector.shape_cast %13 : vector<16xf32> to vector<1x1x16xf32>
    %15 = vector.broadcast %11 : vector<8x20x1xf32> to vector<8x20x16xf32>
    %16 = vector.broadcast %14 : vector<1x1x16xf32> to vector<8x20x16xf32>
    %17 = arith.mulf %15, %16 : vector<8x20x16xf32>
    %18 = arith.addf %9, %17 : vector<8x20x16xf32>
    %19 = vector.extract_strided_slice %0 {offsets = [0, 2], sizes = [8, 20], strides = [1, 1]} : vector<8x22xf32> to vector<8x20xf32>
    %20 = vector.shape_cast %19 : vector<8x20xf32> to vector<8x20x1xf32>
    %21 = vector.extract_strided_slice %1 {offsets = [2, 0], sizes = [1, 16], strides = [1, 1]} : vector<3x16xf32> to vector<1x16xf32>
    %22 = vector.shape_cast %21 : vector<1x16xf32> to vector<16xf32>
    %23 = vector.shape_cast %22 : vector<16xf32> to vector<1x1x16xf32>
    %24 = vector.broadcast %20 : vector<8x20x1xf32> to vector<8x20x16xf32>
    %25 = vector.broadcast %23 : vector<1x1x16xf32> to vector<8x20x16xf32>
    %26 = arith.mulf %24, %25 : vector<8x20x16xf32>
    %27 = arith.addf %18, %26 : vector<8x20x16xf32>
    %c0_3 = arith.constant 0 : index
    %c0_4 = arith.constant 0 : index
    %28 = vector.load %arg3[%c0_3, %c0_4] : memref<1x16xf32, #tpu.memory_space<vmem>>, vector<1x16xf32>
    %29 = vector.shape_cast %28 : vector<1x16xf32> to vector<1x1x16xf32>
    %30 = vector.broadcast %29 : vector<1x1x16xf32> to vector<8x20x16xf32>
    %31 = arith.addf %27, %30 : vector<8x20x16xf32>
    %cst = arith.constant 0.000000e+00 : f32
    %32 = vector.broadcast %cst : f32 to vector<8x20x16xf32>
    %33 = arith.maximumf %31, %32 : vector<8x20x16xf32>
    %34 = vector.shape_cast %33 : vector<8x20x16xf32> to vector<8x10x2x16xf32>
    %35 = vector.extract_strided_slice %34 {offsets = [0, 0, 0, 0], sizes = [8, 10, 1, 16], strides = [1, 1, 1, 1]} : vector<8x10x2x16xf32> to vector<8x10x1x16xf32>
    %36 = vector.shape_cast %35 : vector<8x10x1x16xf32> to vector<8x10x16xf32>
    %37 = vector.extract_strided_slice %34 {offsets = [0, 0, 1, 0], sizes = [8, 10, 1, 16], strides = [1, 1, 1, 1]} : vector<8x10x2x16xf32> to vector<8x10x1x16xf32>
    %38 = vector.shape_cast %37 : vector<8x10x1x16xf32> to vector<8x10x16xf32>
    %39 = arith.maximumf %36, %38 : vector<8x10x16xf32>
    %40 = tpu.iota {dimensions = array<i32: 1>} : vector<8x10x16xi32>
    %c1_i32 = arith.constant 1 : i32
    %41 = vector.broadcast %c1_i32 : i32 to vector<8x10x16xi32>
    %42 = arith.cmpi sge, %40, %41 : vector<8x10x16xi32>
    %c8_i32 = arith.constant 8 : i32
    %43 = vector.broadcast %c8_i32 : i32 to vector<8x10x16xi32>
    %44 = arith.cmpi sle, %40, %43 : vector<8x10x16xi32>
    %45 = arith.andi %42, %44 : vector<8x10x16xi1>
    %cst_5 = arith.constant 0.000000e+00 : f32
    %46 = vector.broadcast %cst_5 : f32 to vector<8x10x16xf32>
    %47 = arith.select %45, %39, %46 : vector<8x10x16xi1>, vector<8x10x16xf32>
    %48 = vector.extract_strided_slice %47 {offsets = [0, 0, 0], sizes = [8, 8, 16], strides = [1, 1, 1]} : vector<8x10x16xf32> to vector<8x8x16xf32>
    %49 = vector.extract_strided_slice %47 {offsets = [0, 1, 0], sizes = [8, 8, 16], strides = [1, 1, 1]} : vector<8x10x16xf32> to vector<8x8x16xf32>
    %50 = vector.extract_strided_slice %47 {offsets = [0, 2, 0], sizes = [8, 8, 16], strides = [1, 1, 1]} : vector<8x10x16xf32> to vector<8x8x16xf32>
    %51 = tpu.concatenate %48, %49, %50 in 2 : vector<8x8x16xf32>, vector<8x8x16xf32>, vector<8x8x16xf32> -> vector<8x8x48xf32>
    %52 = vector.shape_cast %51 : vector<8x8x48xf32> to vector<64x48xf32>
    %c0_6 = arith.constant 0 : index
    %c0_7 = arith.constant 0 : index
    %53 = vector.load %arg4[%c0_6, %c0_7] : memref<48x32xf32, #tpu.memory_space<vmem>>, vector<48x32xf32>
    %cst_8 = arith.constant dense<0.000000e+00> : vector<64x32xf32>
    %54 = tpu.matmul %52, %53, %cst_8 {dimension_numbers = #tpu.dot_dimension_numbers<[1], [0], [0], [1], [0, 0, 1, 1], [], []>} : vector<64x48xf32>, vector<48x32xf32>, vector<64x32xf32> -> vector<64x32xf32>
    %c0_9 = arith.constant 0 : index
    %c0_10 = arith.constant 0 : index
    %55 = vector.load %arg5[%c0_9, %c0_10] : memref<1x32xf32, #tpu.memory_space<vmem>>, vector<1x32xf32>
    %56 = vector.broadcast %55 : vector<1x32xf32> to vector<64x32xf32>
    %57 = arith.addf %54, %56 : vector<64x32xf32>
    %cst_11 = arith.constant 0.000000e+00 : f32
    %58 = vector.broadcast %cst_11 : f32 to vector<64x32xf32>
    %59 = arith.maximumf %57, %58 : vector<64x32xf32>
    %60 = vector.shape_cast %59 : vector<64x32xf32> to vector<8x4x2x32xf32>
    %61 = vector.extract_strided_slice %60 {offsets = [0, 0, 0, 0], sizes = [8, 4, 1, 32], strides = [1, 1, 1, 1]} : vector<8x4x2x32xf32> to vector<8x4x1x32xf32>
    %62 = vector.shape_cast %61 : vector<8x4x1x32xf32> to vector<8x4x32xf32>
    %63 = vector.extract_strided_slice %60 {offsets = [0, 0, 1, 0], sizes = [8, 4, 1, 32], strides = [1, 1, 1, 1]} : vector<8x4x2x32xf32> to vector<8x4x1x32xf32>
    %64 = vector.shape_cast %63 : vector<8x4x1x32xf32> to vector<8x4x32xf32>
    %65 = arith.maximumf %62, %64 : vector<8x4x32xf32>
    %66 = vector.shape_cast %65 : vector<8x4x32xf32> to vector<8x128xf32>
    %c0_12 = arith.constant 0 : index
    %c0_13 = arith.constant 0 : index
    %67 = vector.load %arg6[%c0_12, %c0_13] : memref<128x64xf32, #tpu.memory_space<vmem>>, vector<128x64xf32>
    %cst_14 = arith.constant dense<0.000000e+00> : vector<8x64xf32>
    %68 = tpu.matmul %66, %67, %cst_14 {dimension_numbers = #tpu.dot_dimension_numbers<[1], [0], [0], [1], [0, 0, 1, 1], [], []>} : vector<8x128xf32>, vector<128x64xf32>, vector<8x64xf32> -> vector<8x64xf32>
    %c0_15 = arith.constant 0 : index
    %c0_16 = arith.constant 0 : index
    %69 = vector.load %arg7[%c0_15, %c0_16] : memref<1x64xf32, #tpu.memory_space<vmem>>, vector<1x64xf32>
    %70 = vector.broadcast %69 : vector<1x64xf32> to vector<8x64xf32>
    %71 = arith.addf %68, %70 : vector<8x64xf32>
    %cst_17 = arith.constant 0.000000e+00 : f32
    %72 = vector.broadcast %cst_17 : f32 to vector<8x64xf32>
    %73 = arith.maximumf %71, %72 : vector<8x64xf32>
    %c0_18 = arith.constant 0 : index
    %c0_19 = arith.constant 0 : index
    %74 = vector.load %arg8[%c0_18, %c0_19] : memref<64x32xf32, #tpu.memory_space<vmem>>, vector<64x32xf32>
    %cst_20 = arith.constant dense<0.000000e+00> : vector<8x32xf32>
    %75 = tpu.matmul %73, %74, %cst_20 {dimension_numbers = #tpu.dot_dimension_numbers<[1], [0], [0], [1], [0, 0, 1, 1], [], []>} : vector<8x64xf32>, vector<64x32xf32>, vector<8x32xf32> -> vector<8x32xf32>
    %c0_21 = arith.constant 0 : index
    %c0_22 = arith.constant 0 : index
    %76 = vector.load %arg9[%c0_21, %c0_22] : memref<1x32xf32, #tpu.memory_space<vmem>>, vector<1x32xf32>
    %77 = vector.broadcast %76 : vector<1x32xf32> to vector<8x32xf32>
    %78 = arith.addf %75, %77 : vector<8x32xf32>
    %cst_23 = arith.constant 0.000000e+00 : f32
    %79 = vector.broadcast %cst_23 : f32 to vector<8x32xf32>
    %80 = arith.maximumf %78, %79 : vector<8x32xf32>
    %c0_24 = arith.constant 0 : index
    %c0_25 = arith.constant 0 : index
    %81 = vector.load %arg10[%c0_24, %c0_25] : memref<32x128xf32, #tpu.memory_space<vmem>>, vector<32x128xf32>
    %cst_26 = arith.constant dense<0.000000e+00> : vector<8x128xf32>
    %82 = tpu.matmul %80, %81, %cst_26 {dimension_numbers = #tpu.dot_dimension_numbers<[1], [0], [0], [1], [0, 0, 1, 1], [], []>} : vector<8x32xf32>, vector<32x128xf32>, vector<8x128xf32> -> vector<8x128xf32>
    %c0_27 = arith.constant 0 : index
    %c0_28 = arith.constant 0 : index
    %83 = vector.load %arg11[%c0_27, %c0_28] : memref<1x128xf32, #tpu.memory_space<vmem>>, vector<1x128xf32>
    %84 = vector.broadcast %83 : vector<1x128xf32> to vector<8x128xf32>
    %85 = arith.addf %82, %84 : vector<8x128xf32>
    %c0_29 = arith.constant 0 : index
    %c0_30 = arith.constant 0 : index
    %86 = vector.load %arg12[%c0_29, %c0_30] : memref<8x128xf32, #tpu.memory_space<vmem>>, vector<8x128xf32>
    tpu.vector_store %arg12[%c0_29, %c0_30], %85 {strides = array<i32>} : memref<8x128xf32, #tpu.memory_space<vmem>>, vector<8x128xf32>,
    return
  }
  func.func @transform_0(%arg0: i32) -> (i32, i32) {
    %c0_i32 = arith.constant 0 : i32
    %c0_i32_0 = arith.constant 0 : i32
    return %arg0, %c0_i32 : i32, i32
  }
  func.func @transform_1(%arg0: i32) -> (i32, i32) {
    %c0_i32 = arith.constant 0 : i32
    %c0_i32_0 = arith.constant 0 : i32
    %c0_i32_1 = arith.constant 0 : i32
    return %c0_i32, %c0_i32_0 : i32, i32
  }
  func.func @transform_2(%arg0: i32) -> (i32, i32) {
    %c0_i32 = arith.constant 0 : i32
    %c0_i32_0 = arith.constant 0 : i32
    %c0_i32_1 = arith.constant 0 : i32
    return %c0_i32, %c0_i32_0 : i32, i32
  }
  func.func @transform_3(%arg0: i32) -> (i32, i32) {
    %c0_i32 = arith.constant 0 : i32
    %c0_i32_0 = arith.constant 0 : i32
    %c0_i32_1 = arith.constant 0 : i32
    return %c0_i32, %c0_i32_0 : i32, i32
  }
  func.func @transform_4(%arg0: i32) -> (i32, i32) {
    %c0_i32 = arith.constant 0 : i32
    %c0_i32_0 = arith.constant 0 : i32
    %c0_i32_1 = arith.constant 0 : i32
    return %c0_i32, %c0_i32_0 : i32, i32
  }
  func.func @transform_5(%arg0: i32) -> (i32, i32) {
    %c0_i32 = arith.constant 0 : i32
    %c0_i32_0 = arith.constant 0 : i32
    %c0_i32_1 = arith.constant 0 : i32
    return %c0_i32, %c0_i32_0 : i32, i32
  }
  func.func @transform_6(%arg0: i32) -> (i32, i32) {
    %c0_i32 = arith.constant 0 : i32
    %c0_i32_0 = arith.constant 0 : i32
    %c0_i32_1 = arith.constant 0 : i32
    return %c0_i32, %c0_i32_0 : i32, i32
  }
  func.func @transform_7(%arg0: i32) -> (i32, i32) {
    %c0_i32 = arith.constant 0 : i32
    %c0_i32_0 = arith.constant 0 : i32
    %c0_i32_1 = arith.constant 0 : i32
    return %c0_i32, %c0_i32_0 : i32, i32
  }
  func.func @transform_8(%arg0: i32) -> (i32, i32) {
    %c0_i32 = arith.constant 0 : i32
    %c0_i32_0 = arith.constant 0 : i32
    %c0_i32_1 = arith.constant 0 : i32
    return %c0_i32, %c0_i32_0 : i32, i32
  }
  func.func @transform_9(%arg0: i32) -> (i32, i32) {
    %c0_i32 = arith.constant 0 : i32
    %c0_i32_0 = arith.constant 0 : i32
    %c0_i32_1 = arith.constant 0 : i32
    return %c0_i32, %c0_i32_0 : i32, i32
  }
  func.func @transform_10(%arg0: i32) -> (i32, i32) {
    %c0_i32 = arith.constant 0 : i32
    %c0_i32_0 = arith.constant 0 : i32
    %c0_i32_1 = arith.constant 0 : i32
    return %c0_i32, %c0_i32_0 : i32, i32
  }
  func.func @transform_11(%arg0: i32) -> (i32, i32) {
    %c0_i32 = arith.constant 0 : i32
    %c0_i32_0 = arith.constant 0 : i32
    return %arg0, %c0_i32 : i32, i32
  }
}

</mosaic_0001>

<bundles_post_ra>
// kernel: tpu_custom_call.1
= control target key start
LH: loop header
LB: loop body
LE: loop exit
PB: predicated region body
PF: predicated region fallthrough
CT: control target
= control target key end

     0   :  { %v42_v0 = vlaneseq  ;;  %s3356_s0 = inlined_call_operand.vmem [shape: f32[8,22], index: 0, kind: input, shape index: {}]   ;;  %s3357_s1 = inlined_call_operand.vmem [shape: f32[3,16], index: 1, kind: input, shape index: {}]   ;;  %s3358_s2 = inlined_call_operand.vmem [shape: f32[1,16], index: 2, kind: input, shape index: {}]   ;;  %s3359_s3 = inlined_call_operand.vmem [shape: f32[48,32], index: 3, kind: input, shape index: {}]   ;;  %s3360_s4 = inlined_call_operand.vmem [shape: f32[1,32], index: 4, kind: input, shape index: {}]   ;;  %s3361_s5 = inlined_call_operand.vmem [shape: f32[128,64], index: 5, kind: input, shape index: {}]   ;;  %s3362_s6 = inlined_call_operand.vmem [shape: f32[1,64], index: 6, kind: input, shape index: {}]   ;;  %s3363_s7 = inlined_call_operand.vmem [shape: f32[64,32], index: 7, kind: input, shape index: {}]   ;;  %s3364_s8 = inlined_call_operand.vmem [shape: f32[1,32], index: 8, kind: input, shape index: {}]   ;;  %s3365_s9 = inlined_call_operand.vmem [shape: f32[32,128], index: 9, kind: input, shape index: {}]   ;;  %s3366_s10 = inlined_call_operand.vmem [shape: f32[1,128], index: 10, kind: input, shape index: {}]   ;;  %s3367_s11 = inlined_call_operand.hbm [shape: f32[8,128], index: 11, kind: output, shape index: {}]  }
   0x2   :  { %v2501_v1 = vshrl.u32 %v42_v0, 7 }
   0x3   :  { %16 = vsyncpa [#allocation3], 0  ;;  %v2511_v3 = vld [vmem:[%s3356_s0] sm:$0xff]  ;;  %vm1281_vm0 = vcmask 1041409   ;;  %vm1283_vm1 = vcmask 1042434   ;;  %vm1285_vm2 = vcmask 1043459  }
   0x4   :  { %2338 = vset.pattern.permute.xlu2 %v2501_v1  ;;  %2337 = vset.pattern.permute.xlu0 %v2501_v1  ;;  %v2506_v2 = vadd.s32 2, %v2501_v1  ;;  %v2515_v4 = vperm.slane %v2511_v3, 4  ;;  %v41_v5 = vperm.slane %v2511_v3, 0  ;;  %v2520_v6 = vadd.s32 9, %v2501_v1  ;;  %v40_v25 = vld [vmem:[%s3357_s1] sm:$0x7] }
   0x5   :  { %v2523_v7 = vadd.s32 8, %v2501_v1  ;;  %v2529_v8 = vperm.slane %v2511_v3, 1  ;;  %v2533_v9 = vadd.s32 16, %v2501_v1  ;;  %v2536_v10 = vperm.slane %v2511_v3, 5  ;;  %v2633_v45 = vld [vmem:[%s3358_s2] ss:$0 sm:$0xff] }
   0x6   :  { %2339 = vset.pattern.permute.xlu1 %v2506_v2  ;;  %v2539_v11 = vadd.s32 1, %v2501_v1  ;;  %v2545_v12 = vperm.slane %v2511_v3, 2  ;;  %v2550_v13 = vadd.s32 10, %v2501_v1  ;;  %v2563_v14 = vadd.s32 18, %v2501_v1  ;;  %s2435_s21 = smov 32   ;;  %s2436_s22 = smov 16  }
   0x7   :  { %v2566_v15 = vperm.slane %v2511_v3, 6  ;;  %v2572_v16 = vadd.s32 17, %v2501_v1  ;;  %v2605_v26 = vperm.slane %v40_v25, 0  ;;  %v2608_v28 = vperm.slane %v40_v25, 2  ;;  %s2439_s29 = smov 96   ;;  %s2440_s28 = smov [#allocation2]  }
   0x8   :  { %v2610_v29 = vperm.slane %v40_v25, 1  ;;  %v2650_v61 = vperm.slane %v2511_v3, 3  ;;  %vm1287_vm3 = vcmask 1044484   ;;  %vm1289_vm4 = vcmask 1045509  }
   0x9   :  { %vm1291_vm5 = vcmask 1046534   ;;  %vm1293_vm6 = vcmask 1047559   ;;  %vm1115_vm7 = vcmp.ge.s32.totalorder %v2501_v1, 1  ;;  %vm1118_vm8 = vcmp.le.s32.totalorder %v2523_v7, 8 }
   0xa   :  { %vm1449_vm9 = vcmask 1045504   ;;  %vm1400_vm10 = vcmask 1046528   ;;  %vm1507_vm11 = vcmask 261120   ;;  %vm1498_vm12 = vcmask 130048  }
   0xb   :  { %vm1526_vm13 = vcmask 392192   ;;  %vm1945_vm14 = vcmask 1047556   ;;  %vm2068_vm15 = vcmask 523264  }
   0xc   :  { %122 = vperm.xlu2 %2338, %v2515_v4   ;;  %46 = vperm.xlu0 %2337, %v41_v5  }
   0xe   :  { %415 = vperm.xlu1 %2339, %v41_v5  }
  0x14   :  { %2341 = vset.pattern.permute.xlu2 %v2520_v6  ;;  %2352 = vset.pattern.permute.xlu0 %v2506_v2 }
  0x16   :  { %2340 = vset.pattern.permute.xlu1 %v2523_v7 }
  0x1c   :  { %228 = vperm.xlu2 %2341, %v41_v5   ;;  %433 = vperm.xlu0 %2352, %v2529_v8  }
  0x1e   :  { %52 = vperm.xlu1 %2340, %v41_v5  }
  0x24   :  { %2343 = vset.pattern.permute.xlu2 %v2533_v9  ;;  %505 = vperm.xlu0 %2352, %v2536_v10  }
  0x26   :  { %2342 = vset.pattern.permute.xlu1 %v2539_v11 }
  0x2c   :  { %58 = vperm.xlu2 %2343, %v41_v5   ;;  %451 = vperm.xlu0 %2352, %v2545_v12  }
  0x2e   :  { %294 = vperm.xlu1 %2342, %v2515_v4  }
  0x34   :  { %2345 = vset.pattern.permute.xlu2 %v2506_v2  ;;  %2369 = vset.pattern.permute.xlu0 %v2539_v11 }
  0x36   :  { %2344 = vset.pattern.permute.xlu1 %v2550_v13 }
  0x3c   :  { %487 = vperm.xlu2 %2345, %v2515_v4   ;;  %222 = vperm.xlu0 %2369, %v41_v5  }
  0x3e   :  { %421 = vperm.xlu1 %2344, %v41_v5  }
  0x44   :  { %2347 = vset.pattern.permute.xlu2 %v2523_v7  ;;  %240 = vperm.xlu0 %2369, %v2529_v8  }
  0x46   :  { %2346 = vset.pattern.permute.xlu1 %v2501_v1 }
  0x4c   :  { %128 = vperm.xlu2 %2347, %v2515_v4   ;;  %312 = vperm.xlu0 %2369, %v2536_v10  }
  0x4e   :  { %65 = vperm.xlu1 %2346, %v2529_v8  }
  0x54   :  { %2349 = vset.pattern.permute.xlu2 %v2563_v14  ;;  %330 = vperm.xlu0 %2369, %v2566_v15  }
  0x56   :  { %2348 = vset.pattern.permute.xlu1 %v2520_v6 }
  0x5c   :  { %427 = vperm.xlu2 %2349, %v41_v5   ;;  %2374 = vset.pattern.permute.xlu0 %v2572_v16 }
  0x5e   :  { %300 = vperm.xlu1 %2348, %v2515_v4  }
  0x64   :  { %2351 = vset.pattern.permute.xlu2 %v2572_v16  ;;  %234 = vperm.xlu0 %2374, %v41_v5  }
  0x66   :  { %2350 = vset.pattern.permute.xlu1 %v2533_v9  ;;  %v123_v17 = vpop.permute.xlu2 %122 }
  0x67   :  { %v206_v31 = vmul.f32 %v2605_v26, %v123_v17 }
  0x6c   :  { %306 = vperm.xlu2 %2351, %v2515_v4   ;;  %270 = vperm.xlu0 %2374, %v2545_v12  }
  0x6e   :  { %134 = vperm.xlu1 %2350, %v2515_v4  }
  0x74   :  { %2354 = vset.pattern.permute.xlu2 %v2523_v7  ;;  %2383 = vset.pattern.permute.xlu0 %v2523_v7 }
  0x76   :  { %2353 = vset.pattern.permute.xlu1 %v2550_v13  ;;  %v229_v19 = vpop.permute.xlu2 %228 }
  0x77   :  { %v364_v47 = vmul.f32 %v2610_v29, %v229_v19 }
  0x7c   :  { %71 = vperm.xlu2 %2354, %v2529_v8   ;;  %166 = vperm.xlu0 %2383, %v2566_v15  }
  0x7e   :  { %493 = vperm.xlu1 %2353, %v2515_v4   ;;  %v47_v18 = vpop.permute.xlu0 %46 }
  0x7f   :  { %v194_v38 = vmul.f32 %v2605_v26, %v47_v18 }
  0x80   :  { %v416_v20 = vpop.permute.xlu1 %415 }
  0x81   :  { %v556_v41 = vmul.f32 %v2608_v28, %v416_v20 }
  0x84   :  { %2356 = vset.pattern.permute.xlu2 %v2520_v6  ;;  %2384 = vset.pattern.permute.xlu0 %v2563_v14 }
  0x86   :  { %2355 = vset.pattern.permute.xlu1 %v2501_v1  ;;  %v2594_v22 = vpop.permute.xlu2 %58 }
  0x8c   :  { %246 = vperm.xlu2 %2356, %v2529_v8   ;;  %445 = vperm.xlu0 %2384, %v2529_v8  }
  0x8e   :  { %141 = vperm.xlu1 %2355, %v2536_v10   ;;  %v434_v21 = vpop.permute.xlu0 %433 }
  0x8f   :  { %v559_v52 = vmul.f32 %v2608_v28, %v434_v21 }
  0x90   :  { %v53_v23 = vpop.permute.xlu1 %52 }
  0x91   :  { %v195_v48 = vmul.f32 %v2605_v26, %v53_v23 }
  0x93   :  { %v388_v56 = vadd.f32 %v364_v47, %v195_v48 }
  0x94   :  { %2358 = vset.pattern.permute.xlu2 %v2533_v9  ;;  %463 = vperm.xlu0 %2384, %v2545_v12  }
  0x96   :  { %2357 = vset.pattern.permute.xlu1 %v2563_v14  ;;  %v2598_v24 = vpop.permute.xlu0 %505  ;;  %v488_v27 = vpop.permute.xlu2 %487 }
  0x97   :  { %v568_v33 = vmul.f32 %v2608_v28, %v488_v27 }
  0x9c   :  { %77 = vperm.xlu2 %2358, %v2529_v8   ;;  %2393 = vset.pattern.permute.xlu0 %v2550_v13 }
  0x9e   :  { %499 = vperm.xlu1 %2357, %v2515_v4   ;;  %v2616_v35 = vpop.permute.xlu0 %451 }
  0xa0   :  { %v295_v30 = vpop.permute.xlu1 %294 }
  0xa1   :  { %v375_v32 = vmul.f32 %v2610_v29, %v295_v30 }
  0xa3   :  { %v399_v34 = vadd.f32 %v375_v32, %v206_v31 }
  0xa4   :  { %2360 = vset.pattern.permute.xlu2 %v2550_v13  ;;  %529 = vperm.xlu0 %2393, %v2566_v15  }
  0xa5   :  { %v2619_v36 = vadd.f32 %v568_v33, %v399_v34 }
  0xa6   :  { %2359 = vset.pattern.permute.xlu1 %v2572_v16 }
  0xac   :  { %439 = vperm.xlu2 %2360, %v2529_v8   ;;  %2398 = vset.pattern.permute.xlu0 %v2533_v9 }
  0xae   :  { %252 = vperm.xlu1 %2359, %v2529_v8   ;;  %v223_v37 = vpop.permute.xlu0 %222  ;;  %v129_v8 = vpop.permute.xlu2 %128 }
  0xaf   :  { %v363_v39 = vmul.f32 %v2610_v29, %v223_v37  ;;  %v207_v33 = vmul.f32 %v2605_v26, %v129_v8 }
  0xb0   :  { %v422_v43 = vpop.permute.xlu1 %421 }
  0xb1   :  { %v387_v40 = vadd.f32 %v363_v39, %v194_v38  ;;  %v557_v53 = vmul.f32 %v2608_v28, %v422_v43 }
  0xb3   :  { %v580_v42 = vadd.f32 %v556_v41, %v387_v40  ;;  %v581_v59 = vadd.f32 %v557_v53, %v388_v56 }
  0xb4   :  { %2362 = vset.pattern.permute.xlu2 %v2523_v7  ;;  %115 = vperm.xlu0 %2398, %v2650_v61  }
  0xb5   :  { %v608_v46 = vadd.f32 %v2633_v45, %v580_v42  ;;  %v609_v4 = vadd.f32 %v2633_v45, %v581_v59 }
  0xb6   :  { %2361 = vset.pattern.permute.xlu1 %v2501_v1  ;;  %v241_v44 = vpop.permute.xlu0 %240  ;;  %v428_v39 = vpop.permute.xlu2 %427 }
  0xb7   :  { %v632_v49 = vmax.f32 %v608_v46, 0.0  ;;  %v366_v50 = vmul.f32 %v2610_v29, %v241_v44  ;;  %v633_v21 = vmax.f32 %v609_v4, 0.0  ;;  %v196_v46 = vmul.f32 %v2605_v26, %v2594_v22 }
  0xb9   :  { %v680_v57 = vrot.slane %v632_v49, 2  ;;  %v681_v62 = vrot.slane %v632_v49, 4  ;;  %v2197_v0 = vrot.slane %v632_v49, 9  ;;  %v682_v17 = vrot.slane %v632_v49, 6 }
  0xba   :  { %v683_v32 = vrot.slane %v633_v21, 2  ;;  %v2201_v38 = vrot.slane %v633_v21, 9  ;;  %v684_v43 = vrot.slane %v633_v21, 4  ;;  %v685_v53 = vrot.slane %v633_v21, 6 }
  0xbb   :  { %v2198_v63 = vrot.slane %v680_v57, 9  ;;  %v2199_v5 = vrot.slane %v681_v62, 9  ;;  %v1032_v20 = vmax.f32 %v632_v49, %v2197_v0  ;;  %v2200_v25 = vrot.slane %v682_v17, 9 }
  0xbc   :  { %147 = vperm.xlu2 %2362, %v2536_v10   ;;  %2402 = vset.pattern.permute.xlu0 %v2563_v14  ;;  %v2202_v44 = vrot.slane %v683_v32, 9  ;;  %v1036_v47 = vmax.f32 %v633_v21, %v2201_v38  ;;  %v2203_v56 = vrot.slane %v684_v43, 9 }
  0xbd   :  { %v1033_v18 = vmax.f32 %v680_v57, %v2198_v63  ;;  %v1034_v23 = vmax.f32 %v681_v62, %v2199_v5  ;;  %v1201_v31 = vperm.slane %v1032_v20, 0  ;;  %v1035_v40 = vmax.f32 %v682_v17, %v2200_v25 }
  0xbe   :  { %84 = vperm.xlu1 %2361, %v2545_v12   ;;  %v2644_v55 = vpop.permute.xlu0 %312  ;;  %v1205_v59 = vperm.slane %v1036_v47, 0  ;;  %v2204_v63 = vrot.slane %v685_v53, 9  ;;  %v1038_v4 = vmax.f32 %v684_v43, %v2203_v56 }
  0xbf   :  { %v1202_v27 = vperm.slane %v1033_v18, 0  ;;  %v1203_v37 = vperm.slane %v1034_v23, 0  ;;  %v620_v23 = vadd.f32 %v2633_v45, %v2619_v36 }
  0xc0   :  { %v66_v51 = vpop.permute.xlu1 %65  ;;  %v1039_v20 = vmax.f32 %v685_v53, %v2204_v63 }
  0xc1   :  { %v197_v54 = vmul.f32 %v2605_v26, %v66_v51  ;;  %v1282_v42 = vsel %vm1281_vm0, %v1202_v27, %v1201_v31  ;;  %v1207_v27 = vperm.slane %v1038_v4, 0 }
  0xc2   :  { %v1284_v49 = vsel %vm1283_vm1, %v1203_v37, %v1282_v42 }
  0xc3   :  { %v390_v58 = vadd.f32 %v366_v50, %v197_v54  ;;  %v1204_v50 = vperm.slane %v1035_v40, 0  ;;  %v2673_v54 = vperm.slane %v2511_v3, 7  ;;  %v644_v40 = vmax.f32 %v620_v23, 0.0 }
  0xc4   :  { %2364 = vset.pattern.permute.xlu2 %v2520_v6 }
  0xc5   :  { %v2647_v60 = vadd.f32 %v559_v52, %v390_v58  ;;  %v558_v52 = vmul.f32 %v2608_v28, %v428_v39  ;;  %v1037_v58 = vmax.f32 %v683_v32, %v2202_v44  ;;  %v1286_v22 = vsel %vm1285_vm2, %v1204_v50, %v1284_v49 }
  0xc6   :  { %2363 = vset.pattern.permute.xlu1 %v2539_v11  ;;  %v2656_v19 = vpop.permute.xlu0 %330  ;;  %v307_v0 = vpop.permute.xlu2 %306  ;;  %v1288_v5 = vsel %vm1287_vm3, %v1205_v59, %v1286_v22  ;;  %v1208_v39 = vperm.slane %v1039_v20, 0  ;;  %v709_v53 = vrot.slane %v644_v40, 4  ;;  %v710_v22 = vrot.slane %v644_v40, 6 }
  0xc7   :  { %v1206_v8 = vperm.slane %v1037_v58, 0  ;;  %v377_v18 = vmul.f32 %v2610_v29, %v307_v0  ;;  %v2237_v58 = vrot.slane %v644_v40, 9 }
  0xc8   :  { %v2239_v59 = vrot.slane %v709_v53, 9 }
  0xc9   :  { %v1290_v21 = vsel %vm1289_vm4, %v1206_v8, %v1288_v5  ;;  %v1072_v4 = vmax.f32 %v644_v40, %v2237_v58  ;;  %v2240_v8 = vrot.slane %v710_v22, 9 }
  0xcc   :  { %318 = vperm.xlu2 %2364, %v2536_v10  }
  0xce   :  { %258 = vperm.xlu1 %2363, %v2545_v12  }
  0xd0   :  { %v301_v30 = vpop.permute.xlu1 %300 }
  0xd1   :  { %v376_v34 = vmul.f32 %v2610_v29, %v301_v30 }
  0xd3   :  { %v2662_v41 = vadd.f32 %v376_v34, %v207_v33  ;;  %v1292_v33 = vsel %vm1291_vm5, %v1207_v27, %v1290_v21  ;;  %v1241_v21 = vperm.slane %v1072_v4, 0 }
  0xd4   :  { %2366 = vset.pattern.permute.xlu2 %v2501_v1  ;;  %v1294_v36 = vsel %vm1293_vm6, %v1208_v39, %v1292_v33 }
  0xd6   :  { %2365 = vset.pattern.permute.xlu1 %v2533_v9  ;;  %v235_v48 = vpop.permute.xlu0 %234  ;;  %v2693_v47 = vpop.permute.xlu2 %71 }
  0xd7   :  { %v365_v51 = vmul.f32 %v2610_v29, %v235_v48  ;;  %v2697_v48 = vsel %vm1115_vm7, %v1294_v36, 0.0 }
  0xd9   :  { %v389_v57 = vadd.f32 %v365_v51, %v196_v46  ;;  %v708_v46 = vrot.slane %v644_v40, 2  ;;  %v1450_v51 = vrot.slane %v2697_v48, 2 }
  0xdb   :  { %v582_v62 = vadd.f32 %v558_v52, %v389_v57  ;;  %v2238_v56 = vrot.slane %v708_v46, 9 }
  0xdc   :  { %179 = vperm.xlu2 %2366, %v2673_v54  }
  0xdd   :  { %v610_v3 = vadd.f32 %v2633_v45, %v582_v62  ;;  %v1073_v62 = vmax.f32 %v708_v46, %v2238_v56 }
  0xde   :  { %153 = vperm.xlu1 %2365, %v2536_v10  }
  0xdf   :  { %v634_v17 = vmax.f32 %v610_v3, 0.0 }
  0xe0   :  { %v135_v25 = vpop.permute.xlu1 %134 }
  0xe1   :  { %v686_v30 = vrot.slane %v634_v17, 2  ;;  %v2205_v31 = vrot.slane %v634_v17, 9  ;;  %v208_v32 = vmul.f32 %v2605_v26, %v135_v25  ;;  %v1075_v25 = vmax.f32 %v710_v22, %v2240_v8 }
  0xe3   :  { %v2206_v34 = vrot.slane %v686_v30, 9  ;;  %v1040_v37 = vmax.f32 %v634_v17, %v2205_v31  ;;  %v2686_v38 = vadd.f32 %v377_v18, %v208_v32  ;;  %v1074_v17 = vmax.f32 %v709_v53, %v2239_v59 }
  0xe4   :  { %2368 = vset.pattern.permute.xlu2 %v2539_v11  ;;  %v1242_v18 = vperm.slane %v1073_v62, 0  ;;  %v571_v59 = vmul.f32 %v2608_v28, %v2598_v24  ;;  %v611_v24 = vadd.f32 %v2633_v45, %v2647_v60 }
  0xe5   :  { %v1041_v42 = vmax.f32 %v686_v30, %v2206_v34  ;;  %v1209_v43 = vperm.slane %v1040_v37, 0  ;;  %v1243_v27 = vperm.slane %v1074_v17, 0 }
  0xe6   :  { %2367 = vset.pattern.permute.xlu1 %v2572_v16  ;;  %v247_v5 = vpop.permute.xlu2 %246  ;;  %v1320_v30 = vsel %vm1281_vm0, %v1242_v18, %v1241_v21  ;;  %v198_v18 = vmul.f32 %v2605_v26, %v2693_v47 }
  0xe7   :  { %v1210_v44 = vperm.slane %v1041_v42, 0  ;;  %v1244_v42 = vperm.slane %v1075_v25, 0  ;;  %v635_v25 = vmax.f32 %v611_v24, 0.0 }
  0xe9   :  { %v1295_v49 = vsel %vm1281_vm0, %v1210_v44, %v1209_v43  ;;  %v1321_v43 = vsel %vm1283_vm1, %v1243_v27, %v1320_v30  ;;  %v688_v47 = vrot.slane %v635_v25, 4 }
  0xea   :  { %v2702_v50 = vsel %vm1118_vm8, %v1295_v49, 0.0 }
  0xeb   :  { %v1451_v52 = vrot.slane %v2702_v50, 2 }
  0xec   :  { %348 = vperm.xlu2 %2368, %v2673_v54  }
  0xed   :  { %v1452_v57 = vsel %vm1449_vm9, %v1450_v51, %v1451_v52  ;;  %v378_v52 = vmul.f32 %v2610_v29, %v2644_v55 }
  0xee   :  { %324 = vperm.xlu1 %2367, %v2536_v10   ;;  %1474 = vrot.lane.b32.xlu0 %v1452_v57, %s2435_s21  ;;  %v1322_v57 = vsel %vm1285_vm2, %v1244_v42, %v1321_v43  ;;  %v689_v42 = vrot.slane %v635_v25, 6 }
  0xf0   :  { %v494_v63 = vpop.permute.xlu1 %493 }
  0xf1   :  { %v569_v0 = vmul.f32 %v2608_v28, %v494_v63 }
  0xf3   :  { %v593_v3 = vadd.f32 %v569_v0, %v2662_v41 }
  0xf4   :  { %2371 = vset.pattern.permute.xlu2 %v2523_v7 }
  0xf5   :  { %v621_v20 = vadd.f32 %v2633_v45, %v593_v3 }
  0xf6   :  { %2370 = vset.pattern.permute.xlu1 %v2550_v13  ;;  %v2717_v36 = vpop.permute.xlu2 %77 }
  0xf7   :  { %v645_v23 = vmax.f32 %v621_v20, 0.0  ;;  %v367_v20 = vmul.f32 %v2610_v29, %v247_v5 }
  0xf9   :  { %v711_v31 = vrot.slane %v645_v23, 2  ;;  %v712_v32 = vrot.slane %v645_v23, 4  ;;  %v2241_v33 = vrot.slane %v645_v23, 9  ;;  %v713_v34 = vrot.slane %v645_v23, 6 }
  0xfa   :  { %v391_v27 = vadd.f32 %v367_v20, %v198_v18 }
  0xfb   :  { %v2242_v41 = vrot.slane %v711_v31, 9  ;;  %v1076_v37 = vmax.f32 %v645_v23, %v2241_v33  ;;  %v2243_v39 = vrot.slane %v712_v32, 9  ;;  %v2244_v40 = vrot.slane %v713_v34, 9  ;;  %v2743_v23 = vpop.permute.xlu0 %270 }
  0xfc   :  { %90 = vperm.xlu2 %2371, %v2545_v12  }
  0xfd   :  { %v1245_v44 = vperm.slane %v1076_v37, 0  ;;  %v1077_v46 = vmax.f32 %v711_v31, %v2242_v41  ;;  %v1078_v49 = vmax.f32 %v712_v32, %v2243_v39  ;;  %v1079_v51 = vmax.f32 %v713_v34, %v2244_v40 }
  0xfe   :  { %511 = vperm.xlu1 %2370, %v2536_v10   ;;  %v687_v31 = vrot.slane %v635_v25, 2  ;;  %v2207_v37 = vrot.slane %v635_v25, 9  ;;  %v2209_v40 = vrot.slane %v688_v47, 9 }
  0xff   :  { %v1246_v53 = vperm.slane %v1077_v46, 0  ;;  %v1247_v56 = vperm.slane %v1078_v49, 0  ;;  %v1323_v22 = vsel %vm1287_vm3, %v1245_v44, %v1322_v57  ;;  %v1248_v63 = vperm.slane %v1079_v51, 0 }
 0x100   :  { %v142_v58 = vpop.permute.xlu1 %141  ;;  %v2208_v34 = vrot.slane %v687_v31, 9  ;;  %v1042_v44 = vmax.f32 %v635_v25, %v2207_v37  ;;  %v1044_v49 = vmax.f32 %v688_v47, %v2209_v40 }
 0x101   :  { %v209_v62 = vmul.f32 %v2605_v26, %v142_v58  ;;  %v1324_v0 = vsel %vm1289_vm4, %v1246_v53, %v1323_v22 }
 0x102   :  { %v1325_v4 = vsel %vm1291_vm5, %v1247_v56, %v1324_v0  ;;  %v1043_v43 = vmax.f32 %v687_v31, %v2208_v34  ;;  %v1213_v58 = vperm.slane %v1044_v49, 0  ;;  %v199_v0 = vmul.f32 %v2605_v26, %v2717_v36 }
 0x103   :  { %v402_v3 = vadd.f32 %v378_v52, %v209_v62  ;;  %v2731_v55 = vsel %vm1293_vm6, %v1248_v63, %v1325_v4  ;;  %v2753_v41 = vpop.permute.xlu0 %166  ;;  %v2210_v52 = vrot.slane %v689_v42, 9 }
 0x104   :  { %2373 = vset.pattern.permute.xlu2 %v2520_v6  ;;  %v1212_v53 = vperm.slane %v1043_v43, 0 }
 0x105   :  { %v2734_v8 = vadd.f32 %v571_v59, %v402_v3  ;;  %v1045_v62 = vmax.f32 %v689_v42, %v2210_v52 }
 0x106   :  { %v440_v17 = vpop.permute.xlu2 %439  ;;  %2372 = vset.pattern.permute.xlu1 %v2501_v1 }
 0x107   :  { %v560_v21 = vmul.f32 %v2608_v28, %v440_v17 }
 0x109   :  { %v584_v30 = vadd.f32 %v560_v21, %v391_v27  ;;  %v1214_v27 = vperm.slane %v1045_v62, 0 }
 0x10b   :  { %v612_v60 = vadd.f32 %v2633_v45, %v584_v30  ;;  %v446_v59 = vpop.permute.xlu0 %445 }
 0x10c   :  { %264 = vperm.xlu2 %2373, %v2545_v12   ;;  %v561_v24 = vmul.f32 %v2608_v28, %v446_v59 }
 0x10d   :  { %v636_v39 = vmax.f32 %v612_v60, 0.0 }
 0x10e   :  { %160 = vperm.xlu1 %2372, %v2566_v15  }
 0x10f   :  { %v690_v46 = vrot.slane %v636_v39, 2  ;;  %v2211_v51 = vrot.slane %v636_v39, 9  ;;  %v691_v56 = vrot.slane %v636_v39, 4  ;;  %v692_v18 = vrot.slane %v636_v39, 6 }
 0x110   :  { %v500_v32 = vpop.permute.xlu1 %499 }
 0x111   :  { %v570_v33 = vmul.f32 %v2608_v28, %v500_v32  ;;  %v2212_v57 = vrot.slane %v690_v46, 9  ;;  %v1046_v22 = vmax.f32 %v636_v39, %v2211_v51  ;;  %v2213_v3 = vrot.slane %v691_v56, 9 }
 0x112   :  { %v2214_v32 = vrot.slane %v692_v18, 9 }
 0x113   :  { %v2750_v5 = vadd.f32 %v570_v33, %v2686_v38  ;;  %v1211_v38 = vperm.slane %v1042_v44, 0  ;;  %v1047_v20 = vmax.f32 %v690_v46, %v2212_v57  ;;  %v1215_v21 = vperm.slane %v1046_v22, 0 }
 0x114   :  { %2376 = vset.pattern.permute.xlu2 %v2506_v2  ;;  %v1048_v30 = vmax.f32 %v691_v56, %v2213_v3  ;;  %v1049_v39 = vmax.f32 %v692_v18, %v2214_v32  ;;  %v562_v18 = vmul.f32 %v2608_v28, %v2616_v35 }
 0x115   :  { %v1296_v63 = vsel %vm1281_vm0, %v1212_v53, %v1211_v38  ;;  %v1216_v60 = vperm.slane %v1047_v20, 0 }
 0x116   :  { %2375 = vset.pattern.permute.xlu1 %v2563_v14  ;;  %v1297_v25 = vsel %vm1283_vm1, %v1213_v58, %v1296_v63  ;;  %v1217_v34 = vperm.slane %v1048_v30, 0  ;;  %v148_v42 = vpop.permute.xlu2 %147  ;;  %v1218_v52 = vperm.slane %v1049_v39, 0 }
 0x117   :  { %v1298_v36 = vsel %vm1285_vm2, %v1214_v27, %v1297_v25 }
 0x118   :  { %v1299_v33 = vsel %vm1287_vm3, %v1215_v21, %v1298_v36 }
 0x119   :  { %v1300_v40 = vsel %vm1289_vm4, %v1216_v60, %v1299_v33  ;;  %v623_v33 = vadd.f32 %v2633_v45, %v2734_v8 }
 0x11a   :  { %v1301_v46 = vsel %vm1291_vm5, %v1217_v34, %v1300_v40 }
 0x11b   :  { %v1302_v56 = vsel %vm1293_vm6, %v1218_v52, %v1301_v46 }
 0x11c   :  { %541 = vperm.xlu2 %2376, %v2673_v54   ;;  %v2776_v58 = vsel %vm1115_vm7, %v1302_v56, 0.0 }
 0x11d   :  { %v1404_v63 = vrot.slane %v2776_v58, 1 }
 0x11e   :  { %517 = vperm.xlu1 %2375, %v2536_v10  }
 0x120   :  { %v253_v4 = vpop.permute.xlu1 %252 }
 0x121   :  { %v368_v17 = vmul.f32 %v2610_v29, %v253_v4 }
 0x123   :  { %v392_v10 = vadd.f32 %v368_v17, %v199_v0 }
 0x124   :  { %2378 = vset.pattern.permute.xlu2 %v2523_v7 }
 0x125   :  { %v585_v31 = vadd.f32 %v561_v24, %v392_v10 }
 0x126   :  { %2377 = vset.pattern.permute.xlu1 %v2533_v9  ;;  %v319_v62 = vpop.permute.xlu2 %318 }
 0x127   :  { %v613_v47 = vadd.f32 %v2633_v45, %v585_v31  ;;  %v379_v34 = vmul.f32 %v2610_v29, %v319_v62 }
 0x129   :  { %v637_v37 = vmax.f32 %v613_v47, 0.0  ;;  %v210_v47 = vmul.f32 %v2605_v26, %v148_v42  ;;  %v381_v42 = vmul.f32 %v2610_v29, %v2656_v19 }
 0x12b   :  { %v693_v43 = vrot.slane %v637_v37, 2  ;;  %v2215_v44 = vrot.slane %v637_v37, 9 }
 0x12c   :  { %185 = vperm.xlu2 %2378, %v2673_v54  }
 0x12d   :  { %v2216_v49 = vrot.slane %v693_v43, 9  ;;  %v1050_v51 = vmax.f32 %v637_v37, %v2215_v44  ;;  %v403_v44 = vadd.f32 %v379_v34, %v210_v47 }
 0x12e   :  { %96 = vperm.xlu1 %2377, %v2545_v12  }
 0x12f   :  { %v1051_v53 = vmax.f32 %v693_v43, %v2216_v49  ;;  %v1219_v38 = vperm.slane %v1050_v51, 0  ;;  %v647_v43 = vmax.f32 %v623_v33, 0.0 }
 0x130   :  { %v85_v3 = vpop.permute.xlu1 %84 }
 0x131   :  { %v1220_v57 = vperm.slane %v1051_v53, 0  ;;  %v200_v20 = vmul.f32 %v2605_v26, %v85_v3  ;;  %v716_v51 = vrot.slane %v647_v43, 4 }
 0x133   :  { %v1303_v22 = vsel %vm1281_vm0, %v1220_v57, %v1219_v38  ;;  %v2247_v38 = vrot.slane %v647_v43, 9 }
 0x134   :  { %2380 = vset.pattern.permute.xlu2 %v2550_v13  ;;  %v2782_v59 = vsel %vm1118_vm8, %v1303_v22, 0.0  ;;  %v2249_v22 = vrot.slane %v716_v51, 9 }
 0x135   :  { %v1405_v0 = vrot.slane %v2782_v59, 1 }
 0x136   :  { %2379 = vset.pattern.permute.xlu1 %v2520_v6  ;;  %v180_v17 = vpop.permute.xlu2 %179 }
 0x137   :  { %v1406_v4 = vsel %vm1400_vm10, %v1404_v63, %v1405_v0  ;;  %v215_v10 = vmul.f32 %v2605_v26, %v180_v17  ;;  %v717_v63 = vrot.slane %v647_v43, 6  ;;  %v1084_v17 = vmax.f32 %v716_v51, %v2249_v22 }
 0x138   :  { %1427 = vrot.lane.b32.xlu0 %v1406_v4, %s2436_s22  ;;  %v1082_v4 = vmax.f32 %v647_v43, %v2247_v38 }
 0x13c   :  { %457 = vperm.xlu2 %2380, %v2545_v12  }
 0x13e   :  { %354 = vperm.xlu1 %2379, %v2673_v54  }
 0x140   :  { %v259_v24 = vpop.permute.xlu1 %258 }
 0x141   :  { %v369_v21 = vmul.f32 %v2610_v29, %v259_v24  ;;  %v2250_v24 = vrot.slane %v717_v63, 9 }
 0x143   :  { %v393_v25 = vadd.f32 %v369_v21, %v200_v20  ;;  %v1251_v21 = vperm.slane %v1082_v4, 0 }
 0x144   :  { %2382 = vset.pattern.permute.xlu2 %v2501_v1 }
 0x145   :  { %v2796_v27 = vadd.f32 %v562_v18, %v393_v25 }
 0x146   :  { %2381 = vset.pattern.permute.xlu1 %v2506_v2  ;;  %v349_v12 = vpop.permute.xlu2 %348 }
 0x147   :  { %v384_v30 = vmul.f32 %v2610_v29, %v349_v12 }
 0x149   :  { %v408_v31 = vadd.f32 %v384_v30, %v215_v10  ;;  %v1253_v10 = vperm.slane %v1084_v17, 0  ;;  %v1085_v30 = vmax.f32 %v717_v63, %v2250_v24 }
 0x14c   :  { %103 = vperm.xlu2 %2382, %v2650_v61  }
 0x14e   :  { %523 = vperm.xlu1 %2381, %v2566_v15  }
 0x150   :  { %v154_v32 = vpop.permute.xlu1 %153 }
 0x151   :  { %v211_v33 = vmul.f32 %v2605_v26, %v154_v32 }
 0x154   :  { %2386 = vset.pattern.permute.xlu2 %v2539_v11 }
 0x156   :  { %2385 = vset.pattern.permute.xlu1 %v2533_v9  ;;  %v2807_v35 = vpop.permute.xlu2 %90 }
 0x15c   :  { %276 = vperm.xlu2 %2386, %v2650_v61  }
 0x15e   :  { %191 = vperm.xlu1 %2385, %v2673_v54  }
 0x160   :  { %v325_v60 = vpop.permute.xlu1 %324 }
 0x164   :  { %2388 = vset.pattern.permute.xlu2 %v2572_v16 }
 0x166   :  { %2387 = vset.pattern.permute.xlu1 %v2520_v6  ;;  %v2812_v36 = vpop.permute.xlu2 %264 }
 0x16c   :  { %360 = vperm.xlu2 %2388, %v2673_v54  }
 0x16e   :  { %336 = vperm.xlu1 %2387, %v2566_v15  }
 0x170   :  { %v512_v11 = vpop.permute.xlu1 %511 }
 0x171   :  { %v572_v39 = vmul.f32 %v2608_v28, %v512_v11 }
 0x173   :  { %v596_v49 = vadd.f32 %v572_v39, %v403_v44 }
 0x174   :  { %2390 = vset.pattern.permute.xlu2 %v2533_v9  ;;  %v715_v9 = vrot.slane %v647_v43, 2  ;;  %v1254_v43 = vperm.slane %v1085_v30, 0 }
 0x175   :  { %v624_v8 = vadd.f32 %v2633_v45, %v596_v49 }
 0x176   :  { %v542_v37 = vpop.permute.xlu2 %541  ;;  %2389 = vset.pattern.permute.xlu1 %v2550_v13  ;;  %v2248_v53 = vrot.slane %v715_v9, 9 }
 0x177   :  { %v577_v40 = vmul.f32 %v2608_v28, %v542_v37  ;;  %v648_v57 = vmax.f32 %v624_v8, 0.0 }
 0x178   :  { %v1083_v0 = vmax.f32 %v715_v9, %v2248_v53 }
 0x179   :  { %v2823_v46 = vadd.f32 %v577_v40, %v408_v31  ;;  %v718_v3 = vrot.slane %v648_v57, 2  ;;  %v2251_v19 = vrot.slane %v648_v57, 9  ;;  %v719_v20 = vrot.slane %v648_v57, 4 }
 0x17a   :  { %v1252_v18 = vperm.slane %v1083_v0, 0  ;;  %v720_v47 = vrot.slane %v648_v57, 6 }
 0x17b   :  { %v2252_v25 = vrot.slane %v718_v3, 9  ;;  %v1086_v12 = vmax.f32 %v648_v57, %v2251_v19  ;;  %v2253_v11 = vrot.slane %v719_v20, 9 }
 0x17c   :  { %172 = vperm.xlu2 %2390, %v2566_v15   ;;  %v1328_v31 = vsel %vm1281_vm0, %v1252_v18, %v1251_v21 }
 0x17d   :  { %v1087_v34 = vmax.f32 %v718_v3, %v2252_v25  ;;  %v1255_v37 = vperm.slane %v1086_v12, 0  ;;  %v1329_v40 = vsel %vm1283_vm1, %v1253_v10, %v1328_v31  ;;  %v1088_v9 = vmax.f32 %v719_v20, %v2253_v11 }
 0x17e   :  { %547 = vperm.xlu1 %2389, %v2673_v54   ;;  %v1330_v51 = vsel %vm1285_vm2, %v1254_v43, %v1329_v40  ;;  %v622_v11 = vadd.f32 %v2633_v45, %v2750_v5 }
 0x17f   :  { %v1331_v32 = vsel %vm1287_vm3, %v1255_v37, %v1330_v51  ;;  %v1257_v53 = vperm.slane %v1088_v9, 0  ;;  %v370_v37 = vmul.f32 %v2610_v29, %v2812_v36 }
 0x180   :  { %v161_v52 = vpop.permute.xlu1 %160 }
 0x181   :  { %v212_v56 = vmul.f32 %v2605_v26, %v161_v52 }
 0x183   :  { %v2831_v62 = vadd.f32 %v381_v42, %v212_v56  ;;  %v1256_v42 = vperm.slane %v1087_v34, 0  ;;  %v201_v34 = vmul.f32 %v2605_v26, %v2807_v35  ;;  %v464_v35 = vpop.permute.xlu0 %463 }
 0x184   :  { %2392 = vset.pattern.permute.xlu2 %v2506_v2  ;;  %v380_v2 = vmul.f32 %v2610_v29, %v325_v60  ;;  %v2254_v60 = vrot.slane %v720_v47, 9  ;;  %v564_v9 = vmul.f32 %v2608_v28, %v464_v35 }
 0x185   :  { %v1332_v57 = vsel %vm1289_vm4, %v1256_v42, %v1331_v32 }
 0x186   :  { %2391 = vset.pattern.permute.xlu1 %v2572_v16  ;;  %v404_v44 = vadd.f32 %v380_v2, %v211_v33  ;;  %v1089_v38 = vmax.f32 %v720_v47, %v2254_v60  ;;  %v2848_v0 = vpop.permute.xlu2 %185  ;;  %v1333_v4 = vsel %vm1291_vm5, %v1257_v53, %v1332_v57  ;;  %v614_v47 = vadd.f32 %v2633_v45, %v2796_v27 }
 0x188   :  { %v1258_v19 = vperm.slane %v1089_v38, 0  ;;  %v638_v27 = vmax.f32 %v614_v47, 0.0  ;;  %v1401_v47 = vrot.slane %v2697_v48, 1 }
 0x18a   :  { %v1334_v18 = vsel %vm1293_vm6, %v1258_v19, %v1333_v4  ;;  %v694_v60 = vrot.slane %v638_v27, 2  ;;  %v695_v32 = vrot.slane %v638_v27, 4  ;;  %v696_v19 = vrot.slane %v638_v27, 6 }
 0x18b   :  { %v2856_v25 = vsel %vm1115_vm7, %v1334_v18, 0.0 }
 0x18c   :  { %469 = vperm.xlu2 %2392, %v2650_v61   ;;  %v1465_v30 = vrot.slane %v2856_v25, 2 }
 0x18e   :  { %342 = vperm.xlu1 %2391, %v2566_v15  }
 0x190   :  { %v518_v39 = vpop.permute.xlu1 %517 }
 0x191   :  { %v573_v49 = vmul.f32 %v2608_v28, %v518_v39  ;;  %v646_v39 = vmax.f32 %v622_v11, 0.0  ;;  %v1402_v11 = vrot.slane %v2702_v50, 1 }
 0x193   :  { %v597_v8 = vadd.f32 %v573_v49, %v404_v44  ;;  %v394_v44 = vadd.f32 %v370_v37, %v201_v34  ;;  %v714_v49 = vrot.slane %v646_v39, 2  ;;  %v2245_v53 = vrot.slane %v646_v39, 9 }
 0x194   :  { %2395 = vset.pattern.permute.xlu2 %v2523_v7 }
 0x195   :  { %v625_v52 = vadd.f32 %v2633_v45, %v597_v8 }
 0x196   :  { %2394 = vset.pattern.permute.xlu1 %v2563_v14  ;;  %v458_v31 = vpop.permute.xlu2 %457 }
 0x197   :  { %v649_v56 = vmax.f32 %v625_v52, 0.0  ;;  %v563_v43 = vmul.f32 %v2608_v28, %v458_v31  ;;  %v2220_v31 = vrot.slane %v696_v19, 9 }
 0x199   :  { %v721_v22 = vrot.slane %v649_v56, 2  ;;  %v2255_v63 = vrot.slane %v649_v56, 9  ;;  %v587_v36 = vadd.f32 %v563_v43, %v394_v44  ;;  %v1403_v44 = vsel %vm1400_vm10, %v1401_v47, %v1402_v11 }
 0x19b   :  { %v2256_v3 = vrot.slane %v721_v22, 9  ;;  %v1090_v17 = vmax.f32 %v649_v56, %v2255_v63  ;;  %v2218_v56 = vrot.slane %v694_v60, 9 }
 0x19c   :  { %109 = vperm.xlu2 %2395, %v2650_v61  }
 0x19d   :  { %v1091_v24 = vmax.f32 %v721_v22, %v2256_v3  ;;  %v1259_v20 = vperm.slane %v1090_v17, 0  ;;  %v2217_v22 = vrot.slane %v638_v27, 9  ;;  %v1080_v17 = vmax.f32 %v646_v39, %v2245_v53 }
 0x19e   :  { %553 = vperm.xlu1 %2394, %v2673_v54  }
 0x19f   :  { %v1260_v21 = vperm.slane %v1091_v24, 0  ;;  %v1053_v24 = vmax.f32 %v694_v60, %v2218_v56 }
 0x1a0   :  { %v97_v33 = vpop.permute.xlu1 %96 }
 0x1a1   :  { %v1335_v10 = vsel %vm1281_vm0, %v1260_v21, %v1259_v20  ;;  %v202_v5 = vmul.f32 %v2605_v26, %v97_v33 }
 0x1a2   :  { %v2861_v12 = vsel %vm1118_vm8, %v1335_v10, 0.0 }
 0x1a3   :  { %v1466_v2 = vrot.slane %v2861_v12, 2 }
 0x1a4   :  { %2397 = vset.pattern.permute.xlu2 %v2563_v14 }
 0x1a5   :  { %v1467_v54 = vsel %vm1449_vm9, %v1465_v30, %v1466_v2  ;;  %v1249_v2 = vperm.slane %v1080_v17, 0 }
 0x1a6   :  { %2396 = vset.pattern.permute.xlu1 %v2520_v6  ;;  %1484 = vrot.lane.b32.xlu0 %v1467_v54, %s2435_s21  ;;  %v104_v40 = vpop.permute.xlu2 %103  ;;  %v371_v6 = vmul.f32 %v2610_v29, %v2743_v23  ;;  %v615_v23 = vadd.f32 %v2633_v45, %v587_v36  ;;  %v1222_v54 = vperm.slane %v1053_v24, 0  ;;  %v2907_v36 = vsel %vm1115_vm7, %v2731_v55, 0.0 }
 0x1a7   :  { %v203_v51 = vmul.f32 %v2605_v26, %v104_v40 }
 0x1a8   :  { %v395_v8 = vadd.f32 %v371_v6, %v202_v5  ;;  %v639_v63 = vmax.f32 %v615_v23, 0.0 }
 0x1aa   :  { %v588_v42 = vadd.f32 %v564_v9, %v395_v8  ;;  %v697_v20 = vrot.slane %v639_v63, 2  ;;  %v2221_v30 = vrot.slane %v639_v63, 9  ;;  %v698_v33 = vrot.slane %v639_v63, 4 }
 0x1ab   :  { %v699_v8 = vrot.slane %v639_v63, 6 }
 0x1ac   :  { %535 = vperm.xlu2 %2397, %v2566_v15   ;;  %v2246_v15 = vrot.slane %v714_v49, 9  ;;  %v616_v4 = vadd.f32 %v2633_v45, %v588_v42  ;;  %v2222_v37 = vrot.slane %v697_v20, 9  ;;  %v1056_v43 = vmax.f32 %v639_v63, %v2221_v30 }
 0x1ad   :  { %v2223_v35 = vrot.slane %v698_v33, 9  ;;  %v2224_v56 = vrot.slane %v699_v8, 9 }
 0x1ae   :  { %282 = vperm.xlu1 %2396, %v2650_v61   ;;  %v1081_v57 = vmax.f32 %v714_v49, %v2246_v15  ;;  %v640_v21 = vmax.f32 %v616_v4, 0.0  ;;  %v1057_v60 = vmax.f32 %v697_v20, %v2222_v37  ;;  %v1225_v15 = vperm.slane %v1056_v43, 0 }
 0x1af   :  { %v1058_v53 = vmax.f32 %v698_v33, %v2223_v35  ;;  %v1417_v20 = vrot.slane %v2861_v12, 1  ;;  %v1413_v33 = vrot.slane %v2907_v36, 1 }
 0x1b0   :  { %v1250_v18 = vperm.slane %v1081_v57, 0  ;;  %v700_v39 = vrot.slane %v640_v21, 2  ;;  %v2897_v5 = vpop.permute.xlu1 %354  ;;  %v1226_v57 = vperm.slane %v1057_v60, 0  ;;  %v530_v60 = vpop.permute.xlu0 %529 }
 0x1b2   :  { %v1327_v40 = vsel %vm1281_vm0, %v1250_v18, %v1249_v2  ;;  %v2226_v9 = vrot.slane %v700_v39, 9  ;;  %v1416_v2 = vrot.slane %v2856_v25, 1 }
 0x1b3   :  { %v1377_v50 = vsel %vm1118_vm8, %v1327_v40, 0.0 }
 0x1b4   :  { %2400 = vset.pattern.permute.xlu2 %v2550_v13  ;;  %v2219_v13 = vrot.slane %v695_v32, 9  ;;  %v1418_v11 = vsel %vm1400_vm10, %v1416_v2, %v1417_v20 }
 0x1b6   :  { %2399 = vset.pattern.permute.xlu1 %v2572_v16  ;;  %v277_v52 = vpop.permute.xlu2 %276  ;;  %v1052_v16 = vmax.f32 %v638_v27, %v2217_v22  ;;  %v1054_v10 = vmax.f32 %v695_v32, %v2219_v13  ;;  %v1055_v27 = vmax.f32 %v696_v19, %v2220_v31  ;;  %v1463_v32 = vrot.slane %v1377_v50, 2 }
 0x1b7   :  { %v372_v38 = vmul.f32 %v2610_v29, %v277_v52  ;;  %v1462_v52 = vrot.slane %v2907_v36, 2  ;;  %v1059_v19 = vmax.f32 %v699_v8, %v2224_v56 }
 0x1b8   :  { %v1221_v34 = vperm.slane %v1052_v16, 0  ;;  %v1223_v6 = vperm.slane %v1054_v10, 0  ;;  %v1224_v42 = vperm.slane %v1055_v27, 0  ;;  %v1414_v10 = vrot.slane %v1377_v50, 1 }
 0x1b9   :  { %v2890_v3 = vadd.f32 %v372_v38, %v203_v51  ;;  %v2225_v51 = vrot.slane %v640_v21, 9  ;;  %v1061_v38 = vmax.f32 %v700_v39, %v2226_v9  ;;  %v1464_v13 = vsel %vm1449_vm9, %v1462_v52, %v1463_v32  ;;  %v2952_v9 = vld [vmem:[%s3358_s2] ss:$0 sm:$0xff] }
 0x1ba   :  { %v1304_v49 = vsel %vm1281_vm0, %v1222_v54, %v1221_v34  ;;  %v1228_v31 = vperm.slane %v1059_v19, 0  ;;  %v1415_v34 = vsel %vm1400_vm10, %v1413_v33, %v1414_v10  ;;  %v1454_v27 = vrot.slane %v2782_v59, 2 }
 0x1bb   :  { %v1305_v23 = vsel %vm1283_vm1, %v1223_v6, %v1304_v49  ;;  %v1060_v4 = vmax.f32 %v640_v21, %v2225_v51  ;;  %v1230_v24 = vperm.slane %v1061_v38, 0  ;;  %v629_v8 = vadd.f32 %v2952_v9, %v2823_v46 }
 0x1bc   :  { %475 = vperm.xlu2 %2400, %v2650_v61   ;;  %v1306_v22 = vsel %vm1285_vm2, %v1224_v42, %v1305_v23  ;;  %v213_v59 = vmul.f32 %v2605_v26, %v2753_v41  ;;  %v575_v42 = vmul.f32 %v2608_v28, %v530_v60  ;;  %v385_v33 = vmul.f32 %v2610_v29, %v2897_v5 }
 0x1bd   :  { %v1307_v63 = vsel %vm1287_vm3, %v1225_v15, %v1306_v22  ;;  %v1229_v16 = vperm.slane %v1060_v4, 0 }
 0x1be   :  { %288 = vperm.xlu1 %2399, %v2650_v61   ;;  %v1308_v18 = vsel %vm1289_vm4, %v1226_v57, %v1307_v63 }
 0x1bf   :  { %v1311_v54 = vsel %vm1281_vm0, %v1230_v24, %v1229_v16 }
 0x1c0   :  { %v524_v55 = vpop.permute.xlu1 %523  ;;  %v1373_v12 = vsel %vm1118_vm8, %v1311_v54, 0.0 }
 0x1c1   :  { %v574_v17 = vmul.f32 %v2608_v28, %v524_v55  ;;  %v1457_v39 = vrot.slane %v1373_v12, 2  ;;  %v1408_v52 = vrot.slane %v1373_v12, 1 }
 0x1c3   :  { %v598_v21 = vadd.f32 %v574_v17, %v2831_v62 }
 0x1c4   :  { %1425 = vrot.lane.b32.xlu2 %v1403_v44, %s2436_s22 }
 0x1c5   :  { %v626_v62 = vadd.f32 %v2633_v45, %v598_v21  ;;  %v1453_v45 = vrot.slane %v2776_v58, 2 }
 0x1c6   :  { %2401 = vset.pattern.permute.xlu1 %v2563_v14  ;;  %v1227_v14 = vperm.slane %v1058_v53, 0  ;;  %v2961_v53 = vmax.f32 %v629_v8, 0.0 }
 0x1c7   :  { %v650_v6 = vmax.f32 %v626_v62, 0.0  ;;  %v1455_v35 = vsel %vm1449_vm9, %v1453_v45, %v1454_v27 }
 0x1c8   :  { %v1309_v30 = vsel %vm1291_vm5, %v1227_v14, %v1308_v18  ;;  %v729_v4 = vrot.slane %v2961_v53, 2 }
 0x1c9   :  { %v1310_v47 = vsel %vm1293_vm6, %v1228_v31, %v1309_v30  ;;  %v722_v50 = vrot.slane %v650_v6, 2  ;;  %v723_v15 = vrot.slane %v650_v6, 4  ;;  %v2257_v56 = vrot.slane %v650_v6, 9 }
 0x1ca   :  { %v2937_v37 = vsel %vm1115_vm7, %v1310_v47, 0.0  ;;  %v724_v57 = vrot.slane %v650_v6, 6  ;;  %v730_v30 = vrot.slane %v2961_v53, 4  ;;  %v2268_v21 = vrot.slane %v729_v4, 9 }
 0x1cb   :  { %v1456_v43 = vrot.slane %v2937_v37, 2  ;;  %v2258_v51 = vrot.slane %v722_v50, 9  ;;  %v1407_v46 = vrot.slane %v2937_v37, 1  ;;  %v2259_v22 = vrot.slane %v723_v15, 9 }
 0x1cc   :  { %1482 = vrot.lane.b32.xlu2 %v1464_v13, %s2435_s21  ;;  %v1092_v14 = vmax.f32 %v650_v6, %v2257_v56  ;;  %v2260_v24 = vrot.slane %v724_v57, 9  ;;  %v2269_v45 = vrot.slane %v730_v30, 9 }
 0x1cd   :  { %v1458_v44 = vsel %vm1449_vm9, %v1456_v43, %v1457_v39  ;;  %v1093_v55 = vmax.f32 %v722_v50, %v2258_v51  ;;  %v1409_v41 = vsel %vm1400_vm10, %v1407_v46, %v1408_v52  ;;  %v1094_v18 = vmax.f32 %v723_v15, %v2259_v22 }
 0x1ce   :  { %481 = vperm.xlu1 %2401, %v2650_v61   ;;  %v2927_v61 = vpop.permute.xlu2 %360  ;;  %v1261_v2 = vperm.slane %v1092_v14, 0  ;;  %v1095_v47 = vmax.f32 %v724_v57, %v2260_v24  ;;  %v1103_v50 = vmax.f32 %v729_v4, %v2268_v21 }
 0x1cf   :  { %v1262_v16 = vperm.slane %v1093_v55, 0  ;;  %v1263_v12 = vperm.slane %v1094_v18, 0 }
 0x1d0   :  { %v2939_v40 = vpop.permute.xlu1 %191  ;;  %v1272_v55 = vperm.slane %v1103_v50, 0 }
 0x1d4   :  { %1435 = vrot.lane.b32.xlu2 %v1418_v11, %s2436_s22 }
 0x1d6   :  { %1433 = vrot.lane.b32.xlu1 %v1415_v34, %s2436_s22  ;;  %v2946_v49 = vpop.permute.xlu2 %172  ;;  %v1336_v34 = vsel %vm1281_vm0, %v1262_v16, %v1261_v2 }
 0x1d7   :  { %v1337_v15 = vsel %vm1283_vm1, %v1263_v12, %v1336_v34 }
 0x1dc   :  { %1478 = vrot.lane.b32.xlu2 %v1458_v44, %s2435_s21  ;;  %v731_v44 = vrot.slane %v2961_v53, 6 }
 0x1de   :  { %1476 = vrot.lane.b32.xlu1 %v1455_v35, %s2435_s21  ;;  %v216_v35 = vmul.f32 %v2605_v26, %v2848_v0  ;;  %v2270_v0 = vrot.slane %v731_v44, 9 }
 0x1e0   :  { %v337_v23 = vpop.permute.xlu1 %336  ;;  %v1105_v18 = vmax.f32 %v731_v44, %v2270_v0 }
 0x1e1   :  { %v382_v32 = vmul.f32 %v2610_v29, %v337_v23  ;;  %v409_v23 = vadd.f32 %v385_v33, %v216_v35  ;;  %v1517_v35 = vld [vmem:[%s3359_s3 + $0x8] sm:$0xff] }
 0x1e2   :  { %v1274_v34 = vperm.slane %v1105_v18, 0 }
 0x1e3   :  { %v406_v38 = vadd.f32 %v382_v32, %v213_v59 }
 0x1e5   :  { %v599_v63 = vadd.f32 %v575_v42, %v406_v38  ;;  %v1264_v42 = vperm.slane %v1095_v47, 0  ;;  %v1104_v38 = vmax.f32 %v730_v30, %v2269_v45  ;;  %v1519_v47 = vld [vmem:[%s3359_s3 + $0x18] sm:$0xff] }
 0x1e6   :  { %v470_v13 = vpop.permute.xlu2 %469  ;;  %1429 = vrot.lane.b32.xlu1 %v1409_v41, %s2436_s22 }
 0x1e7   :  { %v627_v17 = vadd.f32 %v2952_v9, %v599_v63  ;;  %v565_v19 = vmul.f32 %v2608_v28, %v470_v13  ;;  %v1338_v22 = vsel %vm1285_vm2, %v1264_v42, %v1337_v15 }
 0x1e9   :  { %v651_v20 = vmax.f32 %v627_v17, 0.0  ;;  %v2970_v10 = vadd.f32 %v565_v19, %v2890_v3  ;;  %v2267_v3 = vrot.slane %v2961_v53, 9  ;;  %v1273_v17 = vperm.slane %v1104_v38, 0 }
 0x1eb   :  { %v725_v31 = vrot.slane %v651_v20, 2  ;;  %v2261_v54 = vrot.slane %v651_v20, 9  ;;  %v726_v11 = vrot.slane %v651_v20, 4  ;;  %v727_v62 = vrot.slane %v651_v20, 6 }
 0x1ec   :  { %v1102_v32 = vmax.f32 %v2961_v53, %v2267_v3  ;;  %v1521_v53 = vld [vmem:[%s3359_s3 + $0x28] sm:$0xff]  ;;  %v1518_v3 = vld [vmem:[%s3359_s3 + $0x10] sm:$0xff] }
 0x1ed   :  { %v1096_v39 = vmax.f32 %v651_v20, %v2261_v54  ;;  %v2262_v6 = vrot.slane %v725_v31, 9  ;;  %v2263_v43 = vrot.slane %v726_v11, 9  ;;  %v2264_v27 = vrot.slane %v727_v62, 9  ;;  %1561 = vmatpush.msra.mxu0 %v1521_v53  ;;  %2319 = vmatpush.msra.mxu2 %v1521_v53 }
 0x1ee   :  { %v1271_v4 = vperm.slane %v1102_v32, 0  ;;  %2320 = vmatpush.msra.mxu3 %v1521_v53 }
 0x1ef   :  { %v1265_v8 = vperm.slane %v1096_v39, 0  ;;  %v1097_v59 = vmax.f32 %v725_v31, %v2262_v6  ;;  %v1098_v60 = vmax.f32 %v726_v11, %v2263_v43  ;;  %v1099_v52 = vmax.f32 %v727_v62, %v2264_v27  ;;  %v1520_v31 = vld [vmem:[%s3359_s3 + $0x20] sm:$0xff] }
 0x1f0   :  { %v548_v5 = vpop.permute.xlu1 %547  ;;  %v1344_v16 = vsel %vm1281_vm0, %v1272_v55, %v1271_v4  ;;  %1562 = vmatpush.msra.mxu0 %v1520_v31  ;;  %2321 = vmatpush.msra.mxu2 %v1520_v31  ;;  %v386_v55 = vmul.f32 %v2610_v29, %v2927_v61 }
 0x1f1   :  { %v578_v51 = vmul.f32 %v2608_v28, %v548_v5  ;;  %v1266_v56 = vperm.slane %v1097_v59, 0  ;;  %v1267_v57 = vperm.slane %v1098_v60, 0  ;;  %v1339_v63 = vsel %vm1287_vm3, %v1265_v8, %v1338_v22  ;;  %2322 = vmatpush.msra.mxu3 %v1520_v31  ;;  %v1516_v8 = vld [vmem:[%s3359_s3] sm:$0xff] }
 0x1f2   :  { %v1268_v13 = vperm.slane %v1099_v52, 0  ;;  %v1345_v62 = vsel %vm1283_vm1, %v1273_v17, %v1344_v16  ;;  %1563 = vmatpush.msra.mxu0 %v1519_v47  ;;  %2323 = vmatpush.msra.mxu2 %v1519_v47  ;;  %v3028_v16 = vpop.permute.xlu0 %115 }
 0x1f3   :  { %v602_v46 = vadd.f32 %v578_v51, %v409_v23  ;;  %v1340_v14 = vsel %vm1289_vm4, %v1266_v56, %v1339_v63  ;;  %2324 = vmatpush.msra.mxu3 %v1519_v47  ;;  %v1346_v50 = vsel %vm1285_vm2, %v1274_v34, %v1345_v62  ;;  %v214_v56 = vmul.f32 %v2605_v26, %v2946_v49 }
 0x1f4   :  { %v1341_v24 = vsel %vm1291_vm5, %v1267_v57, %v1340_v14  ;;  %1564 = vmatpush.msra.mxu0 %v1518_v3  ;;  %2325 = vmatpush.msra.mxu2 %v1518_v3  ;;  %v217_v63 = vmul.f32 %v2605_v26, %v2939_v40 }
 0x1f5   :  { %v630_v41 = vadd.f32 %v2952_v9, %v602_v46  ;;  %v2993_v20 = vsel %vm1293_vm6, %v1268_v13, %v1341_v24  ;;  %2326 = vmatpush.msra.mxu3 %v1518_v3 }
 0x1f6   :  { %v3002_v39 = vpop.permute.xlu2 %109  ;;  %1565 = vmatpush.msra.mxu0 %v1517_v35  ;;  %2327 = vmatpush.msra.mxu2 %v1517_v35  ;;  %v410_v17 = vadd.f32 %v386_v55, %v217_v63  ;;  %v3034_v40 = vsel %vm1115_vm7, %v2993_v20, 0.0 }
 0x1f7   :  { %v654_v19 = vmax.f32 %v630_v41, 0.0  ;;  %2328 = vmatpush.msra.mxu3 %v1517_v35  ;;  %v1468_v63 = vrot.slane %v3034_v40, 2 }
 0x1f8   :  { %1566 = vmatpush.msra.mxu0 %v1516_v8  ;;  %2329 = vmatpush.msra.mxu2 %v1516_v8 }
 0x1f9   :  { %v732_v30 = vrot.slane %v654_v19, 2  ;;  %v733_v21 = vrot.slane %v654_v19, 4  ;;  %v2271_v2 = vrot.slane %v654_v19, 9  ;;  %v734_v54 = vrot.slane %v654_v19, 6  ;;  %2330 = vmatpush.msra.mxu3 %v1516_v8 }
 0x1fb   :  { %v2272_v11 = vrot.slane %v732_v30, 9  ;;  %v1106_v33 = vmax.f32 %v654_v19, %v2271_v2  ;;  %v2273_v12 = vrot.slane %v733_v21, 9  ;;  %v2274_v6 = vrot.slane %v734_v54, 9 }
 0x1fd   :  { %v1275_v43 = vperm.slane %v1106_v33, 0  ;;  %v1107_v27 = vmax.f32 %v732_v30, %v2272_v11  ;;  %v1108_v44 = vmax.f32 %v733_v21, %v2273_v12  ;;  %v1109_v45 = vmax.f32 %v734_v54, %v2274_v6 }
 0x1fe   :  { %v1419_v12 = vrot.slane %v3034_v40, 1 }
 0x1ff   :  { %v1276_v5 = vperm.slane %v1107_v27, 0  ;;  %v1277_v59 = vperm.slane %v1108_v44, 0  ;;  %v1347_v60 = vsel %vm1287_vm3, %v1275_v43, %v1346_v50  ;;  %v1278_v23 = vperm.slane %v1109_v45, 0  ;;  %v1475_v27 = vpop.permute.xlu0 %1474 }
 0x200   :  { %v343_v15 = vpop.permute.xlu1 %342 }
 0x201   :  { %v1348_v42 = vsel %vm1289_vm4, %v1276_v5, %v1347_v60  ;;  %v383_v32 = vmul.f32 %v2610_v29, %v343_v15 }
 0x202   :  { %v1349_v51 = vsel %vm1291_vm5, %v1277_v59, %v1348_v42 }
 0x203   :  { %v1350_v52 = vsel %vm1293_vm6, %v1278_v23, %v1349_v51  ;;  %v407_v46 = vadd.f32 %v383_v32, %v214_v56  ;;  %v617_v32 = vadd.f32 %v2952_v9, %v2970_v10 }
 0x204   :  { %v3046_v35 = vsel %vm1115_vm7, %v1350_v52, 0.0  ;;  %v204_v52 = vmul.f32 %v2605_v26, %v3002_v39 }
 0x205   :  { %v1422_v15 = vrot.slane %v3046_v35, 1 }
 0x206   :  { %v536_v38 = vpop.permute.xlu2 %535 }
 0x207   :  { %v576_v57 = vmul.f32 %v2608_v28, %v536_v38 }
 0x209   :  { %v600_v22 = vadd.f32 %v576_v57, %v407_v46 }
 0x20b   :  { %v628_v0 = vadd.f32 %v2952_v9, %v600_v22  ;;  %v641_v22 = vmax.f32 %v617_v32, 0.0 }
 0x20d   :  { %v652_v41 = vmax.f32 %v628_v0, 0.0  ;;  %v701_v10 = vrot.slane %v641_v22, 2 }
 0x20f   :  { %v728_v4 = vrot.slane %v652_v41, 2  ;;  %v2265_v13 = vrot.slane %v652_v41, 9 }
 0x210   :  { %v554_v14 = vpop.permute.xlu1 %553 }
 0x211   :  { %v2266_v19 = vrot.slane %v728_v4, 9  ;;  %v1100_v49 = vmax.f32 %v652_v41, %v2265_v13  ;;  %v579_v53 = vmul.f32 %v2608_v28, %v554_v14  ;;  %v2228_v13 = vrot.slane %v701_v10, 9 }
 0x212   :  { %v2227_v14 = vrot.slane %v641_v22, 9 }
 0x213   :  { %v1101_v24 = vmax.f32 %v728_v4, %v2266_v19  ;;  %v603_v18 = vadd.f32 %v579_v53, %v410_v17  ;;  %v1269_v30 = vperm.slane %v1100_v49, 0  ;;  %v702_v4 = vrot.slane %v641_v22, 4 }
 0x214   :  { %v703_v49 = vrot.slane %v641_v22, 6  ;;  %v1063_v53 = vmax.f32 %v701_v10, %v2228_v13 }
 0x215   :  { %v1270_v21 = vperm.slane %v1101_v24, 0  ;;  %v631_v61 = vadd.f32 %v2952_v9, %v603_v18  ;;  %v2229_v19 = vrot.slane %v702_v4, 9  ;;  %v1062_v24 = vmax.f32 %v641_v22, %v2227_v14 }
 0x216   :  { %v476_v2 = vpop.permute.xlu2 %475 }
 0x217   :  { %v655_v31 = vmax.f32 %v631_v61, 0.0  ;;  %v1343_v54 = vsel %vm1281_vm0, %v1270_v21, %v1269_v30  ;;  %v566_v46 = vmul.f32 %v2608_v28, %v476_v2  ;;  %v1064_v30 = vmax.f32 %v702_v4, %v2229_v19 }
 0x218   :  { %v1381_v11 = vsel %vm1118_vm8, %v1343_v54, 0.0  ;;  %v2230_v2 = vrot.slane %v703_v49, 9 }
 0x219   :  { %v735_v33 = vrot.slane %v655_v31, 2  ;;  %v2275_v47 = vrot.slane %v655_v31, 9  ;;  %v1420_v62 = vrot.slane %v1381_v11, 1  ;;  %v1469_v0 = vrot.slane %v1381_v11, 2 }
 0x21a   :  { %v1231_v11 = vperm.slane %v1062_v24, 0 }
 0x21b   :  { %v2276_v34 = vrot.slane %v735_v33, 9  ;;  %v1110_v6 = vmax.f32 %v655_v31, %v2275_v47  ;;  %v1421_v43 = vsel %vm1400_vm10, %v1419_v12, %v1420_v62  ;;  %v1470_v41 = vsel %vm1449_vm9, %v1468_v63, %v1469_v0 }
 0x21c   :  { %1437 = vrot.lane.b32.xlu2 %v1421_v43, %s2436_s22  ;;  %v1232_v31 = vperm.slane %v1063_v53, 0  ;;  %v1233_v47 = vperm.slane %v1064_v30, 0  ;;  %v205_v62 = vmul.f32 %v2605_v26, %v3028_v16 }
 0x21d   :  { %v1111_v3 = vmax.f32 %v735_v33, %v2276_v34  ;;  %v1279_v44 = vperm.slane %v1110_v6, 0  ;;  %v1065_v34 = vmax.f32 %v703_v49, %v2230_v2 }
 0x21e   :  { %v1426_v20 = vpop.permute.xlu2 %1425  ;;  %v1312_v6 = vsel %vm1281_vm0, %v1232_v31, %v1231_v11 }
 0x21f   :  { %v1280_v45 = vperm.slane %v1111_v3, 0  ;;  %v1499_v50 = vsel %vm1498_vm12, %v2697_v48, %v1426_v20  ;;  %v1471_v48 = vrot.slane %v3046_v35, 2 }
 0x220   :  { %v283_v8 = vpop.permute.xlu1 %282  ;;  %v1508_v5 = vsel %vm1507_vm11, %v1499_v50, %v1475_v27  ;;  %v1313_v50 = vsel %vm1283_vm1, %v1233_v47, %v1312_v6 }
 0x221   :  { %2277 = vmatmul.msk.f32.vlgmr.msra.gmra.mxu0 %vm1526_vm13, %v1508_v5  ;;  %v1351_v59 = vsel %vm1281_vm0, %v1280_v45, %v1279_v44  ;;  %v373_v23 = vmul.f32 %v2610_v29, %v283_v8  ;;  %v1234_v8 = vperm.slane %v1065_v34, 0 }
 0x222   :  { %v1383_v60 = vsel %vm1118_vm8, %v1351_v59, 0.0 }
 0x223   :  { %v1423_v42 = vrot.slane %v1383_v60, 1  ;;  %v1472_v51 = vrot.slane %v1383_v60, 2  ;;  %v397_v57 = vadd.f32 %v373_v23, %v204_v52 }
 0x225   :  { %v1424_v56 = vsel %vm1400_vm10, %v1422_v15, %v1423_v42  ;;  %v1473_v38 = vsel %vm1449_vm9, %v1471_v48, %v1472_v51  ;;  %v590_v55 = vadd.f32 %v566_v46, %v397_v57  ;;  %v1314_v42 = vsel %vm1285_vm2, %v1234_v8, %v1313_v50  ;;  %v1428_v46 = vpop.permute.xlu0 %1427 }
 0x226   :  { %1439 = vrot.lane.b32.xlu0 %v1424_v56, %s2436_s22  ;;  %1488 = vrot.lane.b32.xlu1 %v1473_v38, %s2435_s21  ;;  %v1483_v60 = vpop.permute.xlu2 %1482 }
 0x227   :  { %v618_v39 = vadd.f32 %v2952_v9, %v590_v55 }
 0x229   :  { %v642_v17 = vmax.f32 %v618_v39, 0.0 }
 0x22b   :  { %v704_v18 = vrot.slane %v642_v17, 2  ;;  %v2231_v21 = vrot.slane %v642_v17, 9  ;;  %v705_v54 = vrot.slane %v642_v17, 4  ;;  %v706_v20 = vrot.slane %v642_v17, 6 }
 0x22d   :  { %v2232_v33 = vrot.slane %v704_v18, 9  ;;  %v1066_v12 = vmax.f32 %v642_v17, %v2231_v21  ;;  %v2233_v3 = vrot.slane %v705_v54, 9  ;;  %v2234_v26 = vrot.slane %v706_v20, 9  ;;  %v1485_v53 = vpop.permute.xlu0 %1484 }
 0x22e   :  { %1486 = vrot.lane.b32.xlu0 %v1470_v41, %s2435_s21  ;;  %v1436_v41 = vpop.permute.xlu2 %1435 }
 0x22f   :  { %v1067_v27 = vmax.f32 %v704_v18, %v2232_v33  ;;  %v1235_v44 = vperm.slane %v1066_v12, 0  ;;  %v1068_v15 = vmax.f32 %v705_v54, %v2233_v3  ;;  %v1069_v52 = vmax.f32 %v706_v20, %v2234_v26  ;;  %v3117_v20 = vld [vmem:[%s3360_s4] ss:$0 sm:$0xff] }
 0x230   :  { %v289_v61 = vpop.permute.xlu1 %288  ;;  %v1504_v13 = vsel %vm1498_vm12, %v2856_v25, %v1436_v41 }
 0x231   :  { %v374_v43 = vmul.f32 %v2610_v29, %v289_v61  ;;  %v1236_v16 = vperm.slane %v1067_v27, 0  ;;  %v1315_v29 = vsel %vm1287_vm3, %v1235_v44, %v1314_v42  ;;  %v1237_v51 = vperm.slane %v1068_v15, 0 }
 0x232   :  { %v1513_v30 = vsel %vm1507_vm11, %v1504_v13, %v1485_v53 }
 0x233   :  { %v398_v5 = vadd.f32 %v374_v43, %v205_v62  ;;  %v1316_v56 = vsel %vm1289_vm4, %v1236_v16, %v1315_v29 }
 0x234   :  { %v1317_v55 = vsel %vm1291_vm5, %v1237_v51, %v1316_v56 }
 0x236   :  { %v1479_v11 = vpop.permute.xlu2 %1478 }
 0x240   :  { %v482_v45 = vpop.permute.xlu1 %481 }
 0x241   :  { %v567_v59 = vmul.f32 %v2608_v28, %v482_v45 }
 0x243   :  { %v591_v23 = vadd.f32 %v567_v59, %v398_v5 }
 0x245   :  { %v619_v48 = vadd.f32 %v2952_v9, %v591_v23  ;;  %v1238_v9 = vperm.slane %v1069_v52, 0 }
 0x247   :  { %v643_v32 = vmax.f32 %v619_v48, 0.0  ;;  %v1318_v4 = vsel %vm1293_vm6, %v1238_v9, %v1317_v55 }
 0x248   :  { %v1434_v38 = vpop.permute.xlu1 %1433  ;;  %v1374_v49 = vsel %vm1115_vm7, %v1318_v4, 0.0 }
 0x249   :  { %v707_v57 = vrot.slane %v643_v32, 2  ;;  %v2235_v28 = vrot.slane %v643_v32, 9  ;;  %v1503_v22 = vsel %vm1498_vm12, %v2907_v36, %v1434_v38  ;;  %v1500_v36 = vsel %vm1498_vm12, %v2776_v58, %v1428_v46 }
 0x24a   :  { %v1512_v0 = vsel %vm1507_vm11, %v1503_v22, %v1483_v60  ;;  %v1459_v21 = vrot.slane %v1374_v49, 2  ;;  %v1410_v61 = vrot.slane %v1374_v49, 1 }
 0x24b   :  { %v2236_v63 = vrot.slane %v707_v57, 9  ;;  %v1070_v10 = vmax.f32 %v643_v32, %v2235_v28  ;;  %2281 = vmatmul.msk.f32.vlgmr.msra.gmra.mxu2 %vm1526_vm13, %v1512_v0 }
 0x24d   :  { %v1071_v39 = vmax.f32 %v707_v57, %v2236_v63  ;;  %v1239_v14 = vperm.slane %v1070_v10, 0 }
 0x24f   :  { %v1240_v17 = vperm.slane %v1071_v39, 0 }
 0x250   :  { %v1477_v19 = vpop.permute.xlu1 %1476 }
 0x251   :  { %v1509_v24 = vsel %vm1507_vm11, %v1500_v36, %v1477_v19  ;;  %v1319_v18 = vsel %vm1281_vm0, %v1240_v17, %v1239_v14 }
 0x252   :  { %2278 = vmatmul.msk.f32.gmra.mxu0 %vm1526_vm13, %v1509_v24  ;;  %v1375_v25 = vsel %vm1118_vm8, %v1319_v18, 0.0 }
 0x253   :  { %2282 = vmatmul.msk.f32.gmra.mxu2 %vm1526_vm13, %v1513_v30  ;;  %v1460_v58 = vrot.slane %v1375_v25, 2  ;;  %v1411_v2 = vrot.slane %v1375_v25, 1 }
 0x255   :  { %v1461_v1 = vsel %vm1449_vm9, %v1459_v21, %v1460_v58  ;;  %v1412_v31 = vsel %vm1400_vm10, %v1410_v61, %v1411_v2  ;;  %v2437_v58 = vmov 1934713408  }
 0x256   :  { %1480 = vrot.lane.b32.xlu2 %v1461_v1, %s2435_s21  ;;  %1431 = vrot.lane.b32.xlu1 %v1412_v31, %s2436_s22  ;;  %v1948_v61 = vunpack.c.l.s4 %v2437_v58 }
 0x258   :  { %v1430_v54 = vpop.permute.xlu1 %1429 }
 0x259   :  { %v1501_v7 = vsel %vm1498_vm12, %v2937_v37, %v1430_v54 }
 0x25a   :  { %v1510_v33 = vsel %vm1507_vm11, %v1501_v7, %v1479_v11 }
 0x25b   :  { %2279 = vmatmul.msk.f32.gmra.mxu0 %vm1526_vm13, %v1510_v33 }
 0x276   :  { %v1438_v6 = vpop.permute.xlu2 %1437 }
 0x277   :  { %v1505_v43 = vsel %vm1498_vm12, %v3034_v40, %v1438_v6 }
 0x298   :  { %v1489_v47 = vpop.permute.xlu1 %1488  ;;  %v1440_v12 = vpop.permute.xlu0 %1439 }
 0x299   :  { %v1506_v62 = vsel %vm1498_vm12, %v3046_v35, %v1440_v12 }
 0x29a   :  { %v1515_v34 = vsel %vm1507_vm11, %v1506_v62, %v1489_v47 }
 0x29b   :  { %2284 = vmatmul.msk.f32.vlgmr.msra.gmra.mxu3 %vm1526_vm13, %v1515_v34 }
 0x29e   :  { %v1568_v27 = vpop.f32.mrf.mxu0 }
 0x29f   :  { %v1569_v35 = vadd.f32 %v3117_v20, %v1568_v27 }
 0x2a0   :  { %v1487_v3 = vpop.permute.xlu0 %1486 }
 0x2a1   :  { %v1514_v37 = vsel %vm1507_vm11, %v1505_v43, %v1487_v3  ;;  %v1592_v44 = vmax.f32 %v1569_v35, 0.0  ;;  %v3135_v3 = vunpack.c.0.s8 %v1948_v61 }
 0x2a2   :  { %2283 = vmatmul.msk.f32.gmra.mxu2 %vm1526_vm13, %v1514_v37 }
 0x2a3   :  { %v1608_v45 = vrot.slane %v1592_v44, 2  ;;  %v1610_v50 = vrot.slane %v1592_v44, 6  ;;  %v1609_v15 = vrot.slane %v1592_v44, 4  ;;  %v2285_v16 = vrot.slane %v1592_v44, 9 }
 0x2a5   :  { %v2286_v8 = vrot.slane %v1608_v45, 9  ;;  %v2288_v5 = vrot.slane %v1610_v50, 9  ;;  %v2287_v29 = vrot.slane %v1609_v15, 9  ;;  %v1752_v56 = vmax.f32 %v1592_v44, %v2285_v16 }
 0x2a7   :  { %v1753_v23 = vmax.f32 %v1608_v45, %v2286_v8  ;;  %v1755_v42 = vmax.f32 %v1610_v50, %v2288_v5  ;;  %v1754_v28 = vmax.f32 %v1609_v15, %v2287_v29 }
 0x2a9   :  { %v1818_v48 = vrot.slane %v1753_v23, 7  ;;  %v1825_v38 = vrot.slane %v1755_v42, 7 }
 0x2ab   :  { %v1819_v22 = vsel %vm1281_vm0, %v1818_v48, %v1752_v56  ;;  %v1826_v10 = vsel %vm1281_vm0, %v1825_v38, %v1754_v28 }
 0x2ac   :  { %v1820_v4 = vsel %vm1285_vm2, %v1818_v48, %v1819_v22  ;;  %v1827_v53 = vsel %vm1285_vm2, %v1825_v38, %v1826_v10 }
 0x2ad   :  { %v1821_v30 = vsel %vm1289_vm4, %v1818_v48, %v1820_v4  ;;  %v1828_v62 = vsel %vm1289_vm4, %v1825_v38, %v1827_v53 }
 0x2ae   :  { %v1822_v12 = vsel %vm1293_vm6, %v1818_v48, %v1821_v30  ;;  %v1829_v48 = vsel %vm1293_vm6, %v1825_v38, %v1828_v62 }
 0x2b0   :  { %v1481_v40 = vpop.permute.xlu2 %1480 }
 0x2c8   :  { %v1432_v59 = vpop.permute.xlu1 %1431 }
 0x2c9   :  { %v1502_v60 = vsel %vm1498_vm12, %v1374_v49, %v1432_v59 }
 0x2ca   :  { %v1511_v26 = vsel %vm1507_vm11, %v1502_v60, %v1481_v40 }
 0x2cb   :  { %2280 = vmatmul.msk.f32.gmra.mxu0 %vm1526_vm13, %v1511_v26 }
 0x2ce   :  { %v1580_v51 = vpop.f32.mrf.mxu2 }
 0x2cf   :  { %v1581_v32 = vadd.f32 %v3117_v20, %v1580_v51  ;;  %v1571_v52 = vpop.f32.mrf.mxu0 }
 0x2d0   :  { %v1572_v46 = vadd.f32 %v3117_v20, %v1571_v52 }
 0x2d1   :  { %v1596_v57 = vmax.f32 %v1581_v32, 0.0 }
 0x2d2   :  { %v1593_v0 = vmax.f32 %v1572_v46, 0.0 }
 0x2d3   :  { %v1620_v55 = vrot.slane %v1596_v57, 2  ;;  %v1622_v63 = vrot.slane %v1596_v57, 6  ;;  %v1621_v2 = vrot.slane %v1596_v57, 4  ;;  %v2301_v1 = vrot.slane %v1596_v57, 9 }
 0x2d4   :  { %v1611_v9 = vrot.slane %v1593_v0, 2  ;;  %v1612_v41 = vrot.slane %v1593_v0, 4  ;;  %v1613_v39 = vrot.slane %v1593_v0, 6  ;;  %v2289_v13 = vrot.slane %v1593_v0, 9 }
 0x2d5   :  { %v2302_v14 = vrot.slane %v1620_v55, 9  ;;  %v2304_v24 = vrot.slane %v1622_v63, 9  ;;  %v2303_v27 = vrot.slane %v1621_v2, 9  ;;  %v1768_v50 = vmax.f32 %v1596_v57, %v2301_v1 }
 0x2d6   :  { %v2290_v17 = vrot.slane %v1611_v9, 9  ;;  %v2291_v36 = vrot.slane %v1612_v41, 9  ;;  %v2292_v19 = vrot.slane %v1613_v39, 9  ;;  %v1583_v49 = vpop.f32.mrf.mxu2  ;;  %v1756_v31 = vmax.f32 %v1593_v0, %v2289_v13 }
 0x2d7   :  { %v1584_v18 = vadd.f32 %v3117_v20, %v1583_v49  ;;  %v1769_v11 = vmax.f32 %v1620_v55, %v2302_v14  ;;  %v1771_v34 = vmax.f32 %v1622_v63, %v2304_v24  ;;  %v1770_v51 = vmax.f32 %v1621_v2, %v2303_v27 }
 0x2d8   :  { %v1757_v25 = vmax.f32 %v1611_v9, %v2290_v17  ;;  %v1759_v21 = vmax.f32 %v1613_v39, %v2292_v19  ;;  %v1758_v7 = vmax.f32 %v1612_v41, %v2291_v36 }
 0x2d9   :  { %v1597_v54 = vmax.f32 %v1584_v18, 0.0  ;;  %v1874_v8 = vrot.slane %v1769_v11, 7  ;;  %v1881_v40 = vrot.slane %v1771_v34, 7 }
 0x2da   :  { %v1832_v33 = vrot.slane %v1757_v25, 7  ;;  %v1839_v47 = vrot.slane %v1759_v21, 7 }
 0x2db   :  { %v1623_v37 = vrot.slane %v1597_v54, 2  ;;  %v1624_v45 = vrot.slane %v1597_v54, 4  ;;  %v1625_v23 = vrot.slane %v1597_v54, 6  ;;  %v2305_v42 = vrot.slane %v1597_v54, 9 }
 0x2dc   :  { %v1833_v6 = vsel %vm1281_vm0, %v1832_v33, %v1756_v31  ;;  %v1840_v43 = vsel %vm1281_vm0, %v1839_v47, %v1758_v7  ;;  %v1875_v56 = vsel %vm1281_vm0, %v1874_v8, %v1768_v50  ;;  %v1882_v22 = vsel %vm1281_vm0, %v1881_v40, %v1770_v51 }
 0x2dd   :  { %v1834_v35 = vsel %vm1285_vm2, %v1832_v33, %v1833_v6  ;;  %v1841_v44 = vsel %vm1285_vm2, %v1839_v47, %v1840_v43  ;;  %v2306_v29 = vrot.slane %v1623_v37, 9  ;;  %v2307_v32 = vrot.slane %v1624_v45, 9 }
 0x2de   :  { %v1835_v5 = vsel %vm1289_vm4, %v1832_v33, %v1834_v35  ;;  %v1842_v59 = vsel %vm1289_vm4, %v1839_v47, %v1841_v44  ;;  %v2308_v52 = vrot.slane %v1625_v23, 9  ;;  %v1772_v63 = vmax.f32 %v1597_v54, %v2305_v42 }
 0x2df   :  { %v1836_v60 = vsel %vm1293_vm6, %v1832_v33, %v1835_v5  ;;  %v1843_v15 = vsel %vm1293_vm6, %v1839_v47, %v1842_v59  ;;  %v1773_v57 = vmax.f32 %v1623_v37, %v2306_v29  ;;  %v1876_v38 = vsel %vm1285_vm2, %v1874_v8, %v1875_v56 }
 0x2e0   :  { %v1944_v26 = vrot.slane %v1836_v60, 4  ;;  %v1977_v16 = vrot.slane %v1843_v15, 4  ;;  %v1775_v55 = vmax.f32 %v1625_v23, %v2308_v52  ;;  %v1774_v9 = vmax.f32 %v1624_v45, %v2307_v32 }
 0x2e1   :  { %v1888_v10 = vrot.slane %v1773_v57, 7  ;;  %v1883_v39 = vsel %vm1285_vm2, %v1881_v40, %v1882_v22  ;;  %v1877_v17 = vsel %vm1289_vm4, %v1874_v8, %v1876_v38 }
 0x2e2   :  { %v1946_v46 = vsel %vm1945_vm14, %v1944_v26, %v1822_v12  ;;  %v3147_v28 = vsel %vm1945_vm14, %v1977_v16, %v1829_v48  ;;  %v1895_v41 = vrot.slane %v1775_v55, 7  ;;  %v1884_v49 = vsel %vm1289_vm4, %v1881_v40, %v1883_v39  ;;  %v1574_v26 = vpop.f32.mrf.mxu0 }
 0x2e3   :  { %v3151_v0 = vperm.slane %v1946_v46, %v3135_v3  ;;  %v1889_v4 = vsel %vm1281_vm0, %v1888_v10, %v1772_v63  ;;  %v1878_v25 = vsel %vm1293_vm6, %v1874_v8, %v1877_v17  ;;  %v1885_v58 = vsel %vm1293_vm6, %v1881_v40, %v1884_v49 }
 0x2e4   :  { %v1890_v13 = vsel %vm1285_vm2, %v1888_v10, %v1889_v4  ;;  %v1896_v14 = vsel %vm1281_vm0, %v1895_v41, %v1774_v9  ;;  %v1575_v51 = vadd.f32 %v3117_v20, %v1574_v26 }
 0x2e5   :  { %2013 = vst [vmem:[#allocation1] ss:$4 sm:$0xff] %v3151_v0  ;;  %v1891_v36 = vsel %vm1289_vm4, %v1888_v10, %v1890_v13  ;;  %v1897_v19 = vsel %vm1285_vm2, %v1895_v41, %v1896_v14 }
 0x2e6   :  { %v1892_v53 = vsel %vm1293_vm6, %v1888_v10, %v1891_v36  ;;  %v1898_v24 = vsel %vm1289_vm4, %v1895_v41, %v1897_v19  ;;  %v1594_v52 = vmax.f32 %v1575_v51, 0.0 }
 0x2e7   :  { %v1899_v18 = vsel %vm1293_vm6, %v1895_v41, %v1898_v24  ;;  %v1961_v30 = vrot.slane %v1892_v53, 4 }
 0x2e8   :  { %v1993_v21 = vrot.slane %v1899_v18, 4  ;;  %v1614_v56 = vrot.slane %v1594_v52, 2  ;;  %v2293_v55 = vrot.slane %v1594_v52, 9  ;;  %v1616_v49 = vrot.slane %v1594_v52, 6 }
 0x2e9   :  { %v1962_v61 = vsel %vm1945_vm14, %v1961_v30, %v1878_v25 }
 0x2ea   :  { %v3170_v2 = vperm.slane %v1962_v61, %v3135_v3  ;;  %v3173_v1 = vsel %vm1945_vm14, %v1993_v21, %v1885_v58  ;;  %v2294_v46 = vrot.slane %v1614_v56, 9  ;;  %v1760_v9 = vmax.f32 %v1594_v52, %v2293_v55 }
 0x2eb   :  { %v2296_v61 = vrot.slane %v1616_v49, 9 }
 0x2ec   :  { %2017 = vst [vmem:[#allocation1 + $0x2] ss:$4 sm:$0xff] %v3170_v2  ;;  %v1761_v57 = vmax.f32 %v1614_v56, %v2294_v46  ;;  %v1951_v56 = vrot.slane %v3151_v0, 4  ;;  %v1967_v46 = vrot.slane %v3170_v2, 4 }
 0x2ee   :  { %v1846_v10 = vrot.slane %v1761_v57, 7 }
 0x2f0   :  { %v1847_v4 = vsel %vm1281_vm0, %v1846_v10, %v1760_v9 }
 0x2f1   :  { %v1848_v53 = vsel %vm1285_vm2, %v1846_v10, %v1847_v4  ;;  %v1968_v4 = vsel %vm1945_vm14, 0.0, %v1967_v46 }
 0x31e   :  { %v1589_v31 = vpop.f32.mrf.mxu3 }
 0x31f   :  { %v1590_v54 = vadd.f32 %v3117_v20, %v1589_v31  ;;  %v1849_v31 = vsel %vm1289_vm4, %v1846_v10, %v1848_v53  ;;  %v2085_v53 = vld [vmem:[%s3361_s5 + $0x68] sm:$0xff] }
 0x321   :  { %v3177_v11 = vmax.f32 %v1590_v54, 0.0 }
 0x323   :  { %v1629_v7 = vrot.slane %v3177_v11, 2  ;;  %v2313_v33 = vrot.slane %v3177_v11, 9  ;;  %v1631_v17 = vrot.slane %v3177_v11, 6 }
 0x325   :  { %v2314_v47 = vrot.slane %v1629_v7, 9  ;;  %v1586_v12 = vpop.f32.mrf.mxu2  ;;  %v1780_v43 = vmax.f32 %v3177_v11, %v2313_v33  ;;  %v2316_v25 = vrot.slane %v1631_v17, 9 }
 0x326   :  { %v1587_v62 = vadd.f32 %v3117_v20, %v1586_v12 }
 0x327   :  { %v1781_v34 = vmax.f32 %v1629_v7, %v2314_v47  ;;  %v1630_v7 = vrot.slane %v3177_v11, 4 }
 0x328   :  { %v3182_v6 = vmax.f32 %v1587_v62, 0.0  ;;  %v1615_v62 = vrot.slane %v1594_v52, 4 }
 0x329   :  { %v1916_v37 = vrot.slane %v1781_v34, 7 }
 0x32a   :  { %v1626_v27 = vrot.slane %v3182_v6, 2  ;;  %v2309_v45 = vrot.slane %v3182_v6, 9  ;;  %v1628_v24 = vrot.slane %v3182_v6, 6 }
 0x32b   :  { %v1917_v35 = vsel %vm1281_vm0, %v1916_v37, %v1780_v43  ;;  %v1783_v43 = vmax.f32 %v1631_v17, %v2316_v25 }
 0x32c   :  { %v1918_v44 = vsel %vm1285_vm2, %v1916_v37, %v1917_v35  ;;  %v2310_v50 = vrot.slane %v1626_v27, 9  ;;  %v1776_v59 = vmax.f32 %v3182_v6, %v2309_v45  ;;  %v2312_v33 = vrot.slane %v1628_v24, 9 }
 0x32d   :  { %v1919_v8 = vsel %vm1289_vm4, %v1916_v37, %v1918_v44  ;;  %v1763_v44 = vmax.f32 %v1616_v49, %v2296_v61  ;;  %v1850_v45 = vsel %vm1293_vm6, %v1846_v10, %v1849_v31  ;;  %v1982_v61 = vperm.slane %v3147_v28, %v3135_v3  ;;  %v2081_v28 = vld [vmem:[%s3361_s5 + $0x48] sm:$0xff] }
 0x32e   :  { %v1777_v5 = vmax.f32 %v1626_v27, %v2310_v50  ;;  %v1920_v60 = vsel %vm1293_vm6, %v1916_v37, %v1919_v8  ;;  %v1627_v37 = vrot.slane %v3182_v6, 4  ;;  %v2315_v50 = vrot.slane %v1630_v7, 9 }
 0x32f   :  { %v1969_v16 = vrot.slane %v1920_v60, 4  ;;  %v1779_v8 = vmax.f32 %v1628_v24, %v2312_v33  ;;  %v1923_v60 = vrot.slane %v1783_v43, 7  ;;  %v1853_v26 = vrot.slane %v1763_v44, 7 }
 0x330   :  { %v1902_v40 = vrot.slane %v1777_v5, 7  ;;  %v1782_v6 = vmax.f32 %v1630_v7, %v2315_v50  ;;  %v2080_v50 = vld [vmem:[%s3361_s5 + $0x40] sm:$0xff] }
 0x332   :  { %v1903_v15 = vsel %vm1281_vm0, %v1902_v40, %v1776_v59 }
 0x333   :  { %v1904_v23 = vsel %vm1285_vm2, %v1902_v40, %v1903_v15  ;;  %v2311_v15 = vrot.slane %v1627_v37, 9 }
 0x334   :  { %v1905_v42 = vsel %vm1289_vm4, %v1902_v40, %v1904_v23 }
 0x335   :  { %v1906_v29 = vsel %vm1293_vm6, %v1902_v40, %v1905_v42  ;;  %v2295_v40 = vrot.slane %v1615_v62, 9  ;;  %v1778_v51 = vmax.f32 %v1627_v37, %v2311_v15  ;;  %v2073_v15 = vld [vmem:[%s3361_s5 + $0x8] sm:$0xff] }
 0x336   :  { %v1970_v48 = vsel %vm1945_vm14, %v1969_v16, %v1906_v29  ;;  %v1909_v16 = vrot.slane %v1779_v8, 7  ;;  %v2079_v8 = vld [vmem:[%s3361_s5 + $0x38] sm:$0xff] }
 0x337   :  { %v3199_v32 = vperm.slane %v1970_v48, %v3135_v3  ;;  %v1762_v29 = vmax.f32 %v1615_v62, %v2295_v40  ;;  %v1924_v48 = vsel %vm1281_vm0, %v1923_v60, %v1782_v6  ;;  %v1983_v62 = vrot.slane %v1982_v61, 4  ;;  %v2075_v40 = vld [vmem:[%s3361_s5 + $0x18] sm:$0xff]  ;;  %v2119_v6 = vld [vmem:[%s3363_s7 + $0x30] sm:$0xff] }
 0x339   :  { %2019 = vst [vmem:[#allocation1 + $0x3] ss:$4 sm:$0xff] %v3199_v32  ;;  %v1854_v57 = vsel %vm1281_vm0, %v1853_v26, %v1762_v29  ;;  %v1975_v10 = vrot.slane %v3199_v32, 4  ;;  %v2087_v32 = vld [vmem:[%s3361_s5 + $0x78] sm:$0xff] }
 0x33a   :  { %v1855_v0 = vsel %vm1285_vm2, %v1853_v26, %v1854_v57  ;;  %2092 = vmatpush.msra.mxu1 %v2087_v32  ;;  %v2116_v29 = vld [vmem:[%s3363_s7 + $0x18] sm:$0xff] }
 0x33b   :  { %v1976_v17 = vsel %vm1945_vm14, 0.0, %v1975_v10  ;;  %v2152_v10 = vld [vmem:[%s3365_s9 + $0x18] sm:$0xff] }
 0x33c   :  { %2172 = vmatpush.msrb.mxu3 %v2152_v10 }
 0x348   :  { %v1577_v22 = vpop.f32.mrf.mxu0 }
 0x349   :  { %v1578_v63 = vadd.f32 %v3117_v20, %v1577_v22  ;;  %v1910_v22 = vsel %vm1281_vm0, %v1909_v16, %v1778_v51  ;;  %v2114_v51 = vld [vmem:[%s3363_s7 + $0x8] sm:$0xff] }
 0x34a   :  { %v1911_v2 = vsel %vm1285_vm2, %v1909_v16, %v1910_v22 }
 0x34b   :  { %v1595_v38 = vmax.f32 %v1578_v63, 0.0  ;;  %v1925_v63 = vsel %vm1285_vm2, %v1923_v60, %v1924_v48  ;;  %v2115_v48 = vld [vmem:[%s3363_s7 + $0x10] sm:$0xff] }
 0x34d   :  { %v1617_v41 = vrot.slane %v1595_v38, 2  ;;  %v1619_v39 = vrot.slane %v1595_v38, 6  ;;  %v2297_v13 = vrot.slane %v1595_v38, 9  ;;  %v1618_v18 = vrot.slane %v1595_v38, 4 }
 0x34f   :  { %v2298_v14 = vrot.slane %v1617_v41, 9  ;;  %v2300_v36 = vrot.slane %v1619_v39, 9  ;;  %v1764_v20 = vmax.f32 %v1595_v38, %v2297_v13  ;;  %v2299_v47 = vrot.slane %v1618_v18, 9 }
 0x350   :  { %v1926_v13 = vsel %vm1289_vm4, %v1923_v60, %v1925_v63  ;;  %v2113_v63 = vld [vmem:[%s3363_s7] sm:$0xff] }
 0x351   :  { %v1765_v19 = vmax.f32 %v1617_v41, %v2298_v14  ;;  %v1767_v21 = vmax.f32 %v1619_v39, %v2300_v36  ;;  %v1766_v5 = vmax.f32 %v1618_v18, %v2299_v47  ;;  %v1952_v41 = vsel %vm1945_vm14, 0.0, %v1951_v56  ;;  %v2086_v14 = vld [vmem:[%s3361_s5 + $0x70] sm:$0xff]  ;;  %v2084_v18 = vld [vmem:[%s3361_s5 + $0x60] sm:$0xff] }
 0x352   :  { %v1856_v36 = vsel %vm1289_vm4, %v1853_v26, %v1855_v0  ;;  %v1927_v24 = vsel %vm1293_vm6, %v1923_v60, %v1926_v13  ;;  %2093 = vmatpush.msra.mxu1 %v2086_v14  ;;  %v1998_v47 = vperm.slane %v3173_v1, %v3135_v3  ;;  %v2074_v60 = vld [vmem:[%s3361_s5 + $0x10] sm:$0xff]  ;;  %v2406_v13 = vld [vmem:[%s3364_s8] ss:$0 sm:$0xff] }
 0x353   :  { %v1860_v30 = vrot.slane %v1765_v19, 7  ;;  %v1867_v27 = vrot.slane %v1767_v21, 7  ;;  %v1912_v19 = vsel %vm1289_vm4, %v1909_v16, %v1911_v2  ;;  %v2001_v25 = vrot.slane %v1927_v24, 4 }
 0x354   :  { %2094 = vmatpush.msra.mxu1 %v2085_v53  ;;  %v1999_v43 = vrot.slane %v1998_v47, 4 }
 0x355   :  { %v1861_v58 = vsel %vm1281_vm0, %v1860_v30, %v1764_v20  ;;  %v1868_v23 = vsel %vm1281_vm0, %v1867_v27, %v1766_v5  ;;  %v1857_v20 = vsel %vm1293_vm6, %v1853_v26, %v1856_v36  ;;  %v2078_v5 = vld [vmem:[%s3361_s5 + $0x30] sm:$0xff]  ;;  %v2120_v26 = vld [vmem:[%s3363_s7 + $0x38] sm:$0xff]  ;;  %vm2070_vm0 = vcmask 785408   ;;  %v2407_v36 = vld [vmem:[%s3366_s10] ss:$0 sm:$0xff] }
 0x356   :  { %v1862_v54 = vsel %vm1285_vm2, %v1860_v30, %v1861_v58  ;;  %v1869_v42 = vsel %vm1285_vm2, %v1867_v27, %v1868_v23  ;;  %v2083_v58 = vld [vmem:[%s3361_s5 + $0x58] sm:$0xff]  ;;  %2095 = vmatpush.msra.mxu1 %v2084_v18  ;;  %v2000_v44 = vsel %vm1945_vm14, 0.0, %v1999_v43  ;;  %v2072_v23 = vld [vmem:[%s3361_s5] sm:$0xff]  ;;  %2136 = vmatpush.msrb.mxu2 %v2120_v26 }
 0x357   :  { %v1863_v12 = vsel %vm1289_vm4, %v1860_v30, %v1862_v54  ;;  %v1870_v55 = vsel %vm1289_vm4, %v1867_v27, %v1869_v42  ;;  %v2082_v54 = vld [vmem:[%s3361_s5 + $0x50] sm:$0xff]  ;;  %v2117_v42 = vld [vmem:[%s3363_s7 + $0x20] sm:$0xff] }
 0x358   :  { %v1864_v34 = vsel %vm1293_vm6, %v1860_v30, %v1863_v12  ;;  %v1871_v39 = vsel %vm1293_vm6, %v1867_v27, %v1870_v55  ;;  %v1913_v30 = vsel %vm1293_vm6, %v1909_v16, %v1912_v19  ;;  %2096 = vmatpush.msra.mxu1 %v2083_v58  ;;  %v1984_v27 = vsel %vm1945_vm14, 0.0, %v1983_v62  ;;  %v2118_v16 = vld [vmem:[%s3363_s7 + $0x28] sm:$0xff]  ;;  %2137 = vmatpush.msrb.mxu2 %v2119_v6 }
 0x359   :  { %v1953_v35 = vrot.slane %v1864_v34, 4  ;;  %v1985_v49 = vrot.slane %v1871_v39, 4  ;;  %v2002_v31 = vsel %vm1945_vm14, %v2001_v25, %v1913_v30  ;;  %v2150_v39 = vld [vmem:[%s3365_s9 + $0x8] sm:$0xff] }
 0x35a   :  { %v2006_v12 = vperm.slane %v2002_v31, %v3135_v3  ;;  %2097 = vmatpush.msra.mxu1 %v2082_v54  ;;  %2138 = vmatpush.msrb.mxu2 %v2118_v16 }
 0x35b   :  { %v1954_v11 = vsel %vm1945_vm14, %v1953_v35, %v1850_v45  ;;  %v1986_v21 = vsel %vm1945_vm14, %v1985_v49, %v1857_v20 }
 0x35c   :  { %v1958_v59 = vperm.slane %v1954_v11, %v3135_v3  ;;  %v1990_v33 = vperm.slane %v1986_v21, %v3135_v3  ;;  %2098 = vmatpush.msra.mxu1 %v2081_v28  ;;  %v2007_v37 = vrot.slane %v2006_v12, 4  ;;  %v2077_v11 = vld [vmem:[%s3361_s5 + $0x28] sm:$0xff]  ;;  %2139 = vmatpush.msrb.mxu2 %v2117_v42 }
 0x35e   :  { %2015 = vst [vmem:[#allocation1 + $0x1] ss:$4 sm:$0xff] %v1958_v59  ;;  %v1959_v52 = vrot.slane %v1958_v59, 4  ;;  %v1991_v34 = vrot.slane %v1990_v33, 4  ;;  %v2008_v3 = vsel %vm1945_vm14, 0.0, %v2007_v37  ;;  %2099 = vmatpush.msra.mxu1 %v2080_v50  ;;  %v2076_v59 = vld [vmem:[%s3361_s5 + $0x20] sm:$0xff]  ;;  %2140 = vmatpush.msrb.mxu2 %v2116_v29 }
 0x360   :  { %v1960_v38 = vsel %vm1945_vm14, 0.0, %v1959_v52  ;;  %v1992_v1 = vsel %vm1945_vm14, 0.0, %v1991_v34  ;;  %2100 = vmatpush.msra.mxu1 %v2079_v8  ;;  %2141 = vmatpush.msrb.mxu2 %v2115_v48 }
 0x362   :  { %2101 = vmatpush.msra.mxu1 %v2078_v5  ;;  %2142 = vmatpush.msrb.mxu2 %v2114_v51 }
 0x364   :  { %2102 = vmatpush.msra.mxu1 %v2077_v11  ;;  %2143 = vmatpush.msrb.mxu2 %v2113_v63 }
 0x365   :  { %v3228_v9 = vld.sshfl [vmem:[#allocation1] sm:$0xff pattern:$0x73625140] }
 0x366   :  { %2028 = vst [vmem:[#allocation1 + $0x1] ss:$4 sm:$0xff] %v1960_v38  ;;  %2103 = vmatpush.msra.mxu1 %v2076_v59  ;;  %v2151_v38 = vld [vmem:[%s3365_s9 + $0x10] sm:$0xff] }
 0x367   :  { %2026 = vst [vmem:[#allocation1] ss:$4 sm:$0xff] %v1952_v41  ;;  %2173 = vmatpush.msrb.mxu3 %v2151_v38 }
 0x368   :  { %2030 = vst [vmem:[#allocation1 + $0x2] ss:$4 sm:$0xff] %v1968_v4  ;;  %2104 = vmatpush.msra.mxu1 %v2075_v40  ;;  %v2149_v4 = vld [vmem:[%s3365_s9] sm:$0xff]  ;;  %s2188_s9 = sshll.u32 %s3367_s11, 4  ;;  %s2189_s9 = int_to_ptr.hbm [resolvable:$true] %s2188_s9 }
 0x369   :  { %2032 = vst [vmem:[#allocation1 + $0x3] ss:$4 sm:$0xff] %v1976_v17  ;;  %2174 = vmatpush.msrb.mxu3 %v2150_v39 }
 0x36a   :  { %2105 = vmatpush.msra.mxu1 %v2074_v60 }
 0x36b   :  { %2175 = vmatpush.msrb.mxu3 %v2149_v4 }
 0x36c   :  { %2106 = vmatpush.msra.mxu1 %v2073_v15 }
 0x36e   :  { %2107 = vmatpush.msra.mxu1 %v2072_v23 }
 0x370   :  { %v2033_v7 = vld.sshfl [vmem:[#allocation1] sm:$0xff pattern:$0x73625140] }
 0x371   :  { %2034 = vrot.lane.b32.xlu0 %v2033_v7, %s2435_s21  ;;  %2041 = vst [vmem:[#allocation1] ss:$4 sm:$0xff] %v1982_v61  ;;  %s2438_s21 = smov 64  }
 0x372   :  { %2043 = vst [vmem:[#allocation1 + $0x1] ss:$4 sm:$0xff] %v1990_v33 }
 0x373   :  { %2045 = vst [vmem:[#allocation1 + $0x2] ss:$4 sm:$0xff] %v1998_v47 }
 0x374   :  { %2047 = vst [vmem:[#allocation1 + $0x3] ss:$4 sm:$0xff] %v2006_v12 }
 0x37b   :  { %v2048_v35 = vld.sshfl [vmem:[#allocation1] sm:$0xff pattern:$0x73625140] }
 0x37c   :  { %2049 = vrot.lane.b32.xlu1 %v2048_v35, %s2438_s21  ;;  %2056 = vst [vmem:[#allocation1] ss:$4 sm:$0xff] %v1984_v27  ;;  %s2186_s21 = sshll.u32 %s2440_s28, 4  ;;  %s2187_s21 = int_to_ptr.vmem [resolvable:$true] %s2186_s21 }
 0x37d   :  { %2058 = vst [vmem:[#allocation1 + $0x1] ss:$4 sm:$0xff] %v1992_v1 }
 0x37e   :  { %2060 = vst [vmem:[#allocation1 + $0x2] ss:$4 sm:$0xff] %v2000_v44 }
 0x37f   :  { %2062 = vst [vmem:[#allocation1 + $0x3] ss:$4 sm:$0xff] %v2008_v3 }
 0x386   :  { %v2063_v45 = vld.sshfl [vmem:[#allocation1] sm:$0xff pattern:$0x73625140] }
 0x387   :  { %2064 = vrot.lane.b32.xlu2 %v2063_v45, %s2439_s29 }
 0x3e1   :  { %v2065_v57 = vpop.permute.xlu2 %2064 }
 0x3e3   :  { %v2035_v52 = vpop.permute.xlu0 %2034 }
 0x3e4   :  { %v2067_v56 = vsel %vm1507_vm11, %v3228_v9, %v2035_v52  ;;  %v2405_v9 = vld [vmem:[%s3362_s6] ss:$0 sm:$0xff] }
 0x3ee   :  { %v2050_v46 = vpop.permute.xlu1 %2049 }
 0x3ef   :  { %v2069_v22 = vsel %vm2068_vm15, %v2067_v56, %v2050_v46 }
 0x3f0   :  { %v2071_v55 = vsel %vm2070_vm0, %v2069_v22, %v2065_v57 }
 0x3f1   :  { %2108 = vmatmul.f32.vlgmr.msra.gmra.mxu1 %v2071_v55 }
 0x46e   :  { %v2109_v41 = vpop.f32.mrf.mxu1 }
 0x46f   :  { %v2110_v0 = vadd.f32 %v2405_v9, %v2109_v41 }
 0x471   :  { %v2112_v2 = vmax.f32 %v2110_v0, 0.0 }
 0x473   :  { %2317 = vmatmul.msk.f32.vlgmr.msrb.gmra.mxu2 %vm2068_vm15, %v2112_v2 }
 0x4f6   :  { %v2145_v32 = vpop.f32.mrf.mxu2 }
 0x4f7   :  { %v2146_v14 = vadd.f32 %v2406_v13, %v2145_v32 }
 0x4f9   :  { %v2148_v17 = vmax.f32 %v2146_v14, 0.0 }
 0x4fb   :  { %2318 = vmatmul.msk.f32.vlgmr.msrb.gmra.mxu3 %vm1507_vm11, %v2148_v17 }
 0x57e   :  { %v2177_v19 = vpop.f32.mrf.mxu3 }
 0x57f   :  { %v2178_v49 = vadd.f32 %v2407_v36, %v2177_v19 }
 0x581   :  { %2180 = vst [vmem:[#allocation2] sm:$0xff] %v2178_v49 }
 0x582   :  { %2191 = dma.vmem_to_hbm [thread:$0]  %s2187_s21, 128, %s2189_s9, [#allocation3]  }
 0x583   :  { %2433 = dma.done.wait [#allocation3], 128  }
 0x584   :  { %2434 = vsyncadd [#allocation3], 4294967168 }
 0x585   :  { %2196 = vsyncpa [#allocation3], 1 }

</bundles_post_ra>
